<compile_context>
chip_gen: v7x
topology: tpu7x:2x2x1
jax: 0.10.0
libtpu: 0.0.40
codegen_flags: <defaults>
</compile_context>

<pallas_src>
import functools

import jax
import jax.numpy as jnp
from jax import lax
from jax.experimental import pallas as pl
from jax.experimental.pallas import tpu as pltpu


def _basic_block_kernel(x_ref, w1_ref, s1_ref, b1_ref, w2_ref, s2_ref, b2_ref,
                        o_ref, *, W, HW):
    """Fused BasicBlock on a lane-packed (C, L) block (L = NB * H * W)."""
    f32 = jnp.float32
    C, L = x_ref.shape
    x = x_ref[...].astype(f32)                     # (C, L): conv1 input + identity

    # ---- SAME-padding border masks, built in-kernel from a lane iota.
    # Float floor-division is exact here (all integers are far below 2^24).
    pos = lax.broadcasted_iota(jnp.int32, (1, L), 1).astype(f32)
    q = pos - HW * jnp.floor(pos / HW)             # offset within its image
    c = q - W * jnp.floor(q / W)                   # column within its row
    m_dx = {-1: (c >= 1.0).astype(f32), 0: None, 1: (c <= W - 2.0).astype(f32)}
    m_dy = {-1: (q >= W).astype(f32), 0: None, 1: (q < HW - W).astype(f32)}

    def _combine(dy, dx):
        ms = [m for m in (m_dy[dy], m_dx[dx]) if m is not None]
        if not ms:
            return None
        out = ms[0]
        for m in ms[1:]:
            out = out * m
        return out

    masks = {(dy, dx): _combine(dy, dx) for dy in (-1, 0, 1) for dx in (-1, 0, 1)}

    def tap(src, dy, dx):
        # Lane i of the result holds src[i + dy*W + dx]; out-of-image taps -> 0
        # (cross-row / cross-image roll wraparound is killed by the masks).
        off = dy * W + dx
        t = src if off == 0 else pltpu.roll(src, (-off) % L, 1)
        m = masks[(dy, dx)]
        return t if m is None else t * m

    def conv3x3(src, w_ref):
        # w_ref: (3, Cout, 3*Cin) bf16, dy-band major, K ordered (dx, cin).
        acc = None
        for bi, dy in enumerate((-1, 0, 1)):
            taps = jnp.concatenate([tap(src, dy, dx) for dx in (-1, 0, 1)],
                                   axis=0)                      # (3*Cin, L) f32
            part = jnp.dot(w_ref[bi], taps.astype(jnp.bfloat16),
                           preferred_element_type=f32)          # (Cout, L) f32
            acc = part if acc is None else acc + part
        return acc

    # conv1 -> folded BN1 -> ReLU
    h = conv3x3(x, w1_ref)
    h = jnp.maximum(h * s1_ref[...] + b1_ref[...], 0.0)

    # conv2 -> folded BN2 -> + identity -> ReLU
    o = conv3x3(h, w2_ref)
    o = o * s2_ref[...] + b2_ref[...] + x
    o_ref[...] = jnp.maximum(o, 0.0).astype(o_ref.dtype)


def fold_bn(gamma, beta, mean, var, eps=1e-5):
    scale = gamma / jnp.sqrt(var + eps)
    bias = beta - mean * scale
    return scale, bias


def _band_conv_weight(w_hwio, dtype=jnp.bfloat16):
    """HWIO (3, 3, Cin, Cout) -> (3, Cout, 3*Cin): dy-band major, K = (dx, cin)."""
    cin, cout = w_hwio.shape[2], w_hwio.shape[3]
    w = jnp.transpose(w_hwio, (0, 3, 1, 2))        # (ky, Cout, kx, Cin)
    return w.reshape(3, cout, 3 * cin).astype(dtype)


def _images_per_step(n, hw, target_lanes=512, max_lanes=16384):
    """How many whole images to pack on the lane axis of one grid step."""
    divisors = [d for d in range(1, n + 1) if n % d == 0 and d * hw <= max_lanes]
    if not divisors:
        return 1
    multi_step = [d for d in divisors if n // d >= 2]   # keep >=2 steps (v7x 2 TCs)
    cands = multi_step or divisors
    wide = [d for d in cands if d * hw >= target_lanes]
    return min(wide) if wide else max(cands)


def _vmem_limit_bytes():
    """~3/4 of this generation's VMEM (v7x: 64 MiB, v5e/v6e: 128 MiB)."""
    try:
        cap = getattr(pltpu.get_tpu_info(), "vmem_capacity_bytes", None)
    except Exception:
        cap = None
    if not cap:
        cap = 64 * 1024 * 1024          # conservative default (v7x)
    return int(min(cap * 3 // 4, 100 * 1024 * 1024))


@functools.partial(jax.jit, static_argnames=("resident_params",))
def basic_block_forward(x_nchw, w1, s1, b1, w2, s2, b2, *, resident_params=True):
    """BasicBlock forward.  x_nchw: (N, C, H, W) float32, conv weights HWIO."""
    N, C, H, W = x_nchw.shape
    Cout = w1.shape[-1]
    if C != Cout:
        raise NotImplementedError("identity residual needs inplanes == planes")
    HW = H * W
    if HW % 128:
        # TODO(synk): pad the spatial axis to a lane multiple for odd sizes.
        raise NotImplementedError("H*W must be a multiple of 128")

    NB = _images_per_step(N, HW)        # images packed per grid step
    L = NB * HW                         # lane width of one grid step

    # Lane-packed layout: channels on sublanes, batch x spatial on lanes.
    xp = jnp.transpose(x_nchw.reshape(N, C, HW), (1, 0, 2)).reshape(C, N * HW)

    w1b = _band_conv_weight(w1)         # (3, C, 3C) bf16
    w2b = _band_conv_weight(w2)
    s1c, b1c = s1.reshape(C, 1), b1.reshape(C, 1)
    s2c, b2c = s2.reshape(C, 1), b2.reshape(C, 1)

    def param_spec(shape):
        if resident_params:
            # Whole array resident in VMEM: single-buffered, DMA'd once.
            return pl.BlockSpec(memory_space=pltpu.MemorySpace.VMEM)
        # Fallback: full-array block with a constant index map (double-buffered).
        zero = (0,) * len(shape)
        return pl.BlockSpec(shape, lambda i, _z=zero: _z)

    kernel = functools.partial(_basic_block_kernel, W=W, HW=HW)
    flops = N * HW * C * (4 * 9 * C + 8)
    bytes_accessed = (4 * 2 * N * C * HW + 2 * (w1b.size + w2b.size) + 4 * 4 * C)

    out = pl.pallas_call(
        kernel,
        out_shape=jax.ShapeDtypeStruct((C, N * HW), jnp.float32),
        grid_spec=pltpu.PrefetchScalarGridSpec(
            num_scalar_prefetch=0,
            grid=(N // NB,),
            in_specs=[
                pl.BlockSpec((C, L), lambda i: (0, i)),          # x lane block
                param_spec(w1b.shape),                           # conv1 bands
                param_spec(s1c.shape), param_spec(b1c.shape),    # BN1 scale/bias
                param_spec(w2b.shape),                           # conv2 bands
                param_spec(s2c.shape), param_spec(b2c.shape),    # BN2 scale/bias
            ],
            out_specs=pl.BlockSpec((C, L), lambda i: (0, i)),
        ),
        compiler_params=pltpu.CompilerParams(
            dimension_semantics=("parallel",),
            vmem_limit_bytes=_vmem_limit_bytes(),
        ),
        cost_estimate=pl.CostEstimate(
            flops=flops, transcendentals=0, bytes_accessed=bytes_accessed),
    )(xp, w1b, s1c, b1c, w2b, s2c, b2c)

    return jnp.transpose(out.reshape(C, N, HW), (1, 0, 2)).reshape(N, C, H, W)


def reference_forward(x_nchw, w1, s1, b1, w2, s2, b2):
    """Pure-JAX reference (NHWC convs, f32 HIGHEST precision)."""
    x = jnp.transpose(x_nchw, (0, 2, 3, 1))
    dn = ("NHWC", "HWIO", "NHWC")
    hp = lax.Precision.HIGHEST
    out = lax.conv_general_dilated(x, w1, (1, 1), "SAME",
                                   dimension_numbers=dn, precision=hp)
    out = jnp.maximum(out * s1.reshape(1, 1, 1, -1) + b1.reshape(1, 1, 1, -1), 0.0)
    out = lax.conv_general_dilated(out, w2, (1, 1), "SAME",
                                   dimension_numbers=dn, precision=hp)
    out = out * s2.reshape(1, 1, 1, -1) + b2.reshape(1, 1, 1, -1)
    out = jnp.maximum(out + x, 0.0)
    return jnp.transpose(out, (0, 3, 1, 2))


if __name__ == "__main__":
    # Module-consistent small shapes: inplanes == planes (identity residual),
    # stride=1, dilation=1.  H*W = 256 keeps the lane axis a multiple of 128.
    N, C, H, W = 2, 8, 16, 16
    inplanes = planes = C

    key = jax.random.PRNGKey(0)
    (kx, kw1, kw2, kg1, kb1, km1, kv1,
     kg2, kb2, km2, kv2) = jax.random.split(key, 11)

    x = jax.random.normal(kx, (N, C, H, W), jnp.float32)

    # conv weights (HWIO), bias=False as in the module.
    w1 = 0.1 * jax.random.normal(kw1, (3, 3, inplanes, planes), jnp.float32)
    w2 = 0.1 * jax.random.normal(kw2, (3, 3, planes, planes), jnp.float32)

    # BatchNorm parameters (eval-mode running stats, folded to scale/bias).
    g1 = 1.0 + 0.1 * jax.random.normal(kg1, (planes,), jnp.float32)
    be1 = 0.1 * jax.random.normal(kb1, (planes,), jnp.float32)
    m1 = 0.1 * jax.random.normal(km1, (planes,), jnp.float32)
    v1 = jnp.abs(1.0 + 0.1 * jax.random.normal(kv1, (planes,), jnp.float32))
    g2 = 1.0 + 0.1 * jax.random.normal(kg2, (planes,), jnp.float32)
    be2 = 0.1 * jax.random.normal(kb2, (planes,), jnp.float32)
    m2 = 0.1 * jax.random.normal(km2, (planes,), jnp.float32)
    v2 = jnp.abs(1.0 + 0.1 * jax.random.normal(kv2, (planes,), jnp.float32))

    s1, b1 = fold_bn(g1, be1, m1, v1)
    s2, b2 = fold_bn(g2, be2, m2, v2)

    try:
        out = jax.block_until_ready(
            basic_block_forward(x, w1, s1, b1, w2, s2, b2))
    except Exception:
        # Fallback if whole-array VMEM parameter placement is unsupported by
        # this JAX version: constant-index blocked specs (double-buffered).
        out = jax.block_until_ready(
            basic_block_forward(x, w1, s1, b1, w2, s2, b2,
                                resident_params=False))

    ref = reference_forward(x, w1, s1, b1, w2, s2, b2)
    assert out.shape == (N, C, H, W), out.shape
    err = float(jnp.max(jnp.abs(out - ref)))
    # bf16 MXU operands with f32 accumulation: tolerance relaxed from 1e-4.
    assert err < 5e-2, err

    print("KERNEL_OK")
</pallas_src>

<mosaic_0001>
module attributes {stable_mosaic.version = 11 : i64} {
  func.func @_basic_block_kernel(%arg0: i32, %arg1: memref<8x256xf32, #tpu.memory_space<vmem>>, %arg2: memref<3x8x24xbf16, #tpu.memory_space<vmem>>, %arg3: memref<8x1xf32, #tpu.memory_space<vmem>>, %arg4: memref<8x1xf32, #tpu.memory_space<vmem>>, %arg5: memref<3x8x24xbf16, #tpu.memory_space<vmem>>, %arg6: memref<8x1xf32, #tpu.memory_space<vmem>>, %arg7: memref<8x1xf32, #tpu.memory_space<vmem>>, %arg8: memref<8x256xf32, #tpu.memory_space<vmem>>) attributes {dimension_semantics = [#tpu.dimension_semantics<parallel>], iteration_bounds = array<i64: 2>, scalar_prefetch = 0 : i64, scratch_operands = 0 : i64, tpu.core_type = #tpu.core_type<tc>, window_params = [{transform_indices = @transform_0, window_bounds = array<i64: 8, 256>}, {pipeline_mode = #tpu.pipeline_mode<synchronous>, transform_indices = @transform_1, window_bounds = array<i64: 3, 8, 24>}, {pipeline_mode = #tpu.pipeline_mode<synchronous>, transform_indices = @transform_2, window_bounds = array<i64: 8, 1>}, {pipeline_mode = #tpu.pipeline_mode<synchronous>, transform_indices = @transform_3, window_bounds = array<i64: 8, 1>}, {pipeline_mode = #tpu.pipeline_mode<synchronous>, transform_indices = @transform_4, window_bounds = array<i64: 3, 8, 24>}, {pipeline_mode = #tpu.pipeline_mode<synchronous>, transform_indices = @transform_5, window_bounds = array<i64: 8, 1>}, {pipeline_mode = #tpu.pipeline_mode<synchronous>, transform_indices = @transform_6, window_bounds = array<i64: 8, 1>}, {transform_indices = @transform_7, window_bounds = array<i64: 8, 256>}]} {
    %c0 = arith.constant 0 : index
    %c0_0 = arith.constant 0 : index
    %0 = vector.load %arg1[%c0, %c0_0] : memref<8x256xf32, #tpu.memory_space<vmem>>, vector<8x256xf32>
    %1 = tpu.iota {dimensions = array<i32: 1>} : vector<1x256xi32>
    %2 = arith.sitofp %1 : vector<1x256xi32> to vector<1x256xf32>
    %cst = arith.constant 2.560000e+02 : f32
    %3 = vector.broadcast %cst : f32 to vector<1x256xf32>
    %4 = arith.divf %2, %3 : vector<1x256xf32>
    %5 = math.floor %4 : vector<1x256xf32>
    %cst_1 = arith.constant 2.560000e+02 : f32
    %6 = vector.broadcast %cst_1 : f32 to vector<1x256xf32>
    %7 = arith.mulf %6, %5 : vector<1x256xf32>
    %8 = arith.subf %2, %7 : vector<1x256xf32>
    %cst_2 = arith.constant 1.600000e+01 : f32
    %9 = vector.broadcast %cst_2 : f32 to vector<1x256xf32>
    %10 = arith.divf %8, %9 : vector<1x256xf32>
    %11 = math.floor %10 : vector<1x256xf32>
    %cst_3 = arith.constant 1.600000e+01 : f32
    %12 = vector.broadcast %cst_3 : f32 to vector<1x256xf32>
    %13 = arith.mulf %12, %11 : vector<1x256xf32>
    %14 = arith.subf %8, %13 : vector<1x256xf32>
    %cst_4 = arith.constant 1.000000e+00 : f32
    %15 = vector.broadcast %cst_4 : f32 to vector<1x256xf32>
    %16 = arith.cmpf oge, %14, %15 : vector<1x256xf32>
    %17 = arith.extui %16 : vector<1x256xi1> to vector<1x256xi32>
    %18 = arith.sitofp %17 : vector<1x256xi32> to vector<1x256xf32>
    %cst_5 = arith.constant 1.400000e+01 : f32
    %19 = vector.broadcast %cst_5 : f32 to vector<1x256xf32>
    %20 = arith.cmpf ole, %14, %19 : vector<1x256xf32>
    %21 = arith.extui %20 : vector<1x256xi1> to vector<1x256xi32>
    %22 = arith.sitofp %21 : vector<1x256xi32> to vector<1x256xf32>
    %cst_6 = arith.constant 1.600000e+01 : f32
    %23 = vector.broadcast %cst_6 : f32 to vector<1x256xf32>
    %24 = arith.cmpf oge, %8, %23 : vector<1x256xf32>
    %25 = arith.extui %24 : vector<1x256xi1> to vector<1x256xi32>
    %26 = arith.sitofp %25 : vector<1x256xi32> to vector<1x256xf32>
    %cst_7 = arith.constant 2.400000e+02 : f32
    %27 = vector.broadcast %cst_7 : f32 to vector<1x256xf32>
    %28 = arith.cmpf olt, %8, %27 : vector<1x256xf32>
    %29 = arith.extui %28 : vector<1x256xi1> to vector<1x256xi32>
    %30 = arith.sitofp %29 : vector<1x256xi32> to vector<1x256xf32>
    %31 = arith.mulf %26, %18 : vector<1x256xf32>
    %32 = arith.mulf %26, %22 : vector<1x256xf32>
    %33 = arith.mulf %30, %18 : vector<1x256xf32>
    %34 = arith.mulf %30, %22 : vector<1x256xf32>
    %c17_i32 = arith.constant 17 : i32
    %35 = tpu.dynamic_rotate %0 by %c17_i32 dim 1 : vector<8x256xf32>, i32 -> vector<8x256xf32>
    %36 = vector.broadcast %31 : vector<1x256xf32> to vector<8x256xf32>
    %37 = arith.mulf %35, %36 : vector<8x256xf32>
    %c16_i32 = arith.constant 16 : i32
    %38 = tpu.dynamic_rotate %0 by %c16_i32 dim 1 : vector<8x256xf32>, i32 -> vector<8x256xf32>
    %39 = vector.broadcast %26 : vector<1x256xf32> to vector<8x256xf32>
    %40 = arith.mulf %38, %39 : vector<8x256xf32>
    %c15_i32 = arith.constant 15 : i32
    %41 = tpu.dynamic_rotate %0 by %c15_i32 dim 1 : vector<8x256xf32>, i32 -> vector<8x256xf32>
    %42 = vector.broadcast %32 : vector<1x256xf32> to vector<8x256xf32>
    %43 = arith.mulf %41, %42 : vector<8x256xf32>
    %44 = tpu.concatenate %37, %40, %43 in 0 : vector<8x256xf32>, vector<8x256xf32>, vector<8x256xf32> -> vector<24x256xf32>
    %c0_8 = arith.constant 0 : index
    %c0_9 = arith.constant 0 : index
    %c0_10 = arith.constant 0 : index
    %45 = vector.load %arg2[%c0_8, %c0_9, %c0_10] : memref<3x8x24xbf16, #tpu.memory_space<vmem>>, vector<1x8x24xbf16>
    %46 = vector.shape_cast %45 : vector<1x8x24xbf16> to vector<8x24xbf16>
    %47 = arith.truncf %44 : vector<24x256xf32> to vector<24x256xbf16>
    %cst_11 = arith.constant dense<0.000000e+00> : vector<8x256xf32>
    %48 = tpu.matmul %46, %47, %cst_11 {dimension_numbers = #tpu.dot_dimension_numbers<[1], [0], [0], [1], [0, 0, 1, 1], [], []>} : vector<8x24xbf16>, vector<24x256xbf16>, vector<8x256xf32> -> vector<8x256xf32>
    %c1_i32 = arith.constant 1 : i32
    %49 = tpu.dynamic_rotate %0 by %c1_i32 dim 1 : vector<8x256xf32>, i32 -> vector<8x256xf32>
    %50 = vector.broadcast %18 : vector<1x256xf32> to vector<8x256xf32>
    %51 = arith.mulf %49, %50 : vector<8x256xf32>
    %c255_i32 = arith.constant 255 : i32
    %52 = tpu.dynamic_rotate %0 by %c255_i32 dim 1 : vector<8x256xf32>, i32 -> vector<8x256xf32>
    %53 = vector.broadcast %22 : vector<1x256xf32> to vector<8x256xf32>
    %54 = arith.mulf %52, %53 : vector<8x256xf32>
    %55 = tpu.concatenate %51, %0, %54 in 0 : vector<8x256xf32>, vector<8x256xf32>, vector<8x256xf32> -> vector<24x256xf32>
    %c1 = arith.constant 1 : index
    %c0_12 = arith.constant 0 : index
    %c0_13 = arith.constant 0 : index
    %56 = vector.load %arg2[%c1, %c0_12, %c0_13] : memref<3x8x24xbf16, #tpu.memory_space<vmem>>, vector<1x8x24xbf16>
    %57 = vector.shape_cast %56 : vector<1x8x24xbf16> to vector<8x24xbf16>
    %58 = arith.truncf %55 : vector<24x256xf32> to vector<24x256xbf16>
    %cst_14 = arith.constant dense<0.000000e+00> : vector<8x256xf32>
    %59 = tpu.matmul %57, %58, %cst_14 {dimension_numbers = #tpu.dot_dimension_numbers<[1], [0], [0], [1], [0, 0, 1, 1], [], []>} : vector<8x24xbf16>, vector<24x256xbf16>, vector<8x256xf32> -> vector<8x256xf32>
    %60 = arith.addf %48, %59 : vector<8x256xf32>
    %c241_i32 = arith.constant 241 : i32
    %61 = tpu.dynamic_rotate %0 by %c241_i32 dim 1 : vector<8x256xf32>, i32 -> vector<8x256xf32>
    %62 = vector.broadcast %33 : vector<1x256xf32> to vector<8x256xf32>
    %63 = arith.mulf %61, %62 : vector<8x256xf32>
    %c240_i32 = arith.constant 240 : i32
    %64 = tpu.dynamic_rotate %0 by %c240_i32 dim 1 : vector<8x256xf32>, i32 -> vector<8x256xf32>
    %65 = vector.broadcast %30 : vector<1x256xf32> to vector<8x256xf32>
    %66 = arith.mulf %64, %65 : vector<8x256xf32>
    %c239_i32 = arith.constant 239 : i32
    %67 = tpu.dynamic_rotate %0 by %c239_i32 dim 1 : vector<8x256xf32>, i32 -> vector<8x256xf32>
    %68 = vector.broadcast %34 : vector<1x256xf32> to vector<8x256xf32>
    %69 = arith.mulf %67, %68 : vector<8x256xf32>
    %70 = tpu.concatenate %63, %66, %69 in 0 : vector<8x256xf32>, vector<8x256xf32>, vector<8x256xf32> -> vector<24x256xf32>
    %c2 = arith.constant 2 : index
    %c0_15 = arith.constant 0 : index
    %c0_16 = arith.constant 0 : index
    %71 = vector.load %arg2[%c2, %c0_15, %c0_16] : memref<3x8x24xbf16, #tpu.memory_space<vmem>>, vector<1x8x24xbf16>
    %72 = vector.shape_cast %71 : vector<1x8x24xbf16> to vector<8x24xbf16>
    %73 = arith.truncf %70 : vector<24x256xf32> to vector<24x256xbf16>
    %cst_17 = arith.constant dense<0.000000e+00> : vector<8x256xf32>
    %74 = tpu.matmul %72, %73, %cst_17 {dimension_numbers = #tpu.dot_dimension_numbers<[1], [0], [0], [1], [0, 0, 1, 1], [], []>} : vector<8x24xbf16>, vector<24x256xbf16>, vector<8x256xf32> -> vector<8x256xf32>
    %75 = arith.addf %60, %74 : vector<8x256xf32>
    %c0_18 = arith.constant 0 : index
    %c0_19 = arith.constant 0 : index
    %76 = vector.load %arg3[%c0_18, %c0_19] : memref<8x1xf32, #tpu.memory_space<vmem>>, vector<8x1xf32>
    %77 = vector.broadcast %76 : vector<8x1xf32> to vector<8x256xf32>
    %78 = arith.mulf %75, %77 : vector<8x256xf32>
    %c0_20 = arith.constant 0 : index
    %c0_21 = arith.constant 0 : index
    %79 = vector.load %arg4[%c0_20, %c0_21] : memref<8x1xf32, #tpu.memory_space<vmem>>, vector<8x1xf32>
    %80 = vector.broadcast %79 : vector<8x1xf32> to vector<8x256xf32>
    %81 = arith.addf %78, %80 : vector<8x256xf32>
    %cst_22 = arith.constant 0.000000e+00 : f32
    %82 = vector.broadcast %cst_22 : f32 to vector<8x256xf32>
    %83 = arith.maximumf %81, %82 : vector<8x256xf32>
    %c17_i32_23 = arith.constant 17 : i32
    %84 = tpu.dynamic_rotate %83 by %c17_i32_23 dim 1 : vector<8x256xf32>, i32 -> vector<8x256xf32>
    %85 = vector.broadcast %31 : vector<1x256xf32> to vector<8x256xf32>
    %86 = arith.mulf %84, %85 : vector<8x256xf32>
    %c16_i32_24 = arith.constant 16 : i32
    %87 = tpu.dynamic_rotate %83 by %c16_i32_24 dim 1 : vector<8x256xf32>, i32 -> vector<8x256xf32>
    %88 = vector.broadcast %26 : vector<1x256xf32> to vector<8x256xf32>
    %89 = arith.mulf %87, %88 : vector<8x256xf32>
    %c15_i32_25 = arith.constant 15 : i32
    %90 = tpu.dynamic_rotate %83 by %c15_i32_25 dim 1 : vector<8x256xf32>, i32 -> vector<8x256xf32>
    %91 = vector.broadcast %32 : vector<1x256xf32> to vector<8x256xf32>
    %92 = arith.mulf %90, %91 : vector<8x256xf32>
    %93 = tpu.concatenate %86, %89, %92 in 0 : vector<8x256xf32>, vector<8x256xf32>, vector<8x256xf32> -> vector<24x256xf32>
    %c0_26 = arith.constant 0 : index
    %c0_27 = arith.constant 0 : index
    %c0_28 = arith.constant 0 : index
    %94 = vector.load %arg5[%c0_26, %c0_27, %c0_28] : memref<3x8x24xbf16, #tpu.memory_space<vmem>>, vector<1x8x24xbf16>
    %95 = vector.shape_cast %94 : vector<1x8x24xbf16> to vector<8x24xbf16>
    %96 = arith.truncf %93 : vector<24x256xf32> to vector<24x256xbf16>
    %cst_29 = arith.constant dense<0.000000e+00> : vector<8x256xf32>
    %97 = tpu.matmul %95, %96, %cst_29 {dimension_numbers = #tpu.dot_dimension_numbers<[1], [0], [0], [1], [0, 0, 1, 1], [], []>} : vector<8x24xbf16>, vector<24x256xbf16>, vector<8x256xf32> -> vector<8x256xf32>
    %c1_i32_30 = arith.constant 1 : i32
    %98 = tpu.dynamic_rotate %83 by %c1_i32_30 dim 1 : vector<8x256xf32>, i32 -> vector<8x256xf32>
    %99 = vector.broadcast %18 : vector<1x256xf32> to vector<8x256xf32>
    %100 = arith.mulf %98, %99 : vector<8x256xf32>
    %c255_i32_31 = arith.constant 255 : i32
    %101 = tpu.dynamic_rotate %83 by %c255_i32_31 dim 1 : vector<8x256xf32>, i32 -> vector<8x256xf32>
    %102 = vector.broadcast %22 : vector<1x256xf32> to vector<8x256xf32>
    %103 = arith.mulf %101, %102 : vector<8x256xf32>
    %104 = tpu.concatenate %100, %83, %103 in 0 : vector<8x256xf32>, vector<8x256xf32>, vector<8x256xf32> -> vector<24x256xf32>
    %c1_32 = arith.constant 1 : index
    %c0_33 = arith.constant 0 : index
    %c0_34 = arith.constant 0 : index
    %105 = vector.load %arg5[%c1_32, %c0_33, %c0_34] : memref<3x8x24xbf16, #tpu.memory_space<vmem>>, vector<1x8x24xbf16>
    %106 = vector.shape_cast %105 : vector<1x8x24xbf16> to vector<8x24xbf16>
    %107 = arith.truncf %104 : vector<24x256xf32> to vector<24x256xbf16>
    %cst_35 = arith.constant dense<0.000000e+00> : vector<8x256xf32>
    %108 = tpu.matmul %106, %107, %cst_35 {dimension_numbers = #tpu.dot_dimension_numbers<[1], [0], [0], [1], [0, 0, 1, 1], [], []>} : vector<8x24xbf16>, vector<24x256xbf16>, vector<8x256xf32> -> vector<8x256xf32>
    %109 = arith.addf %97, %108 : vector<8x256xf32>
    %c241_i32_36 = arith.constant 241 : i32
    %110 = tpu.dynamic_rotate %83 by %c241_i32_36 dim 1 : vector<8x256xf32>, i32 -> vector<8x256xf32>
    %111 = vector.broadcast %33 : vector<1x256xf32> to vector<8x256xf32>
    %112 = arith.mulf %110, %111 : vector<8x256xf32>
    %c240_i32_37 = arith.constant 240 : i32
    %113 = tpu.dynamic_rotate %83 by %c240_i32_37 dim 1 : vector<8x256xf32>, i32 -> vector<8x256xf32>
    %114 = vector.broadcast %30 : vector<1x256xf32> to vector<8x256xf32>
    %115 = arith.mulf %113, %114 : vector<8x256xf32>
    %c239_i32_38 = arith.constant 239 : i32
    %116 = tpu.dynamic_rotate %83 by %c239_i32_38 dim 1 : vector<8x256xf32>, i32 -> vector<8x256xf32>
    %117 = vector.broadcast %34 : vector<1x256xf32> to vector<8x256xf32>
    %118 = arith.mulf %116, %117 : vector<8x256xf32>
    %119 = tpu.concatenate %112, %115, %118 in 0 : vector<8x256xf32>, vector<8x256xf32>, vector<8x256xf32> -> vector<24x256xf32>
    %c2_39 = arith.constant 2 : index
    %c0_40 = arith.constant 0 : index
    %c0_41 = arith.constant 0 : index
    %120 = vector.load %arg5[%c2_39, %c0_40, %c0_41] : memref<3x8x24xbf16, #tpu.memory_space<vmem>>, vector<1x8x24xbf16>
    %121 = vector.shape_cast %120 : vector<1x8x24xbf16> to vector<8x24xbf16>
    %122 = arith.truncf %119 : vector<24x256xf32> to vector<24x256xbf16>
    %cst_42 = arith.constant dense<0.000000e+00> : vector<8x256xf32>
    %123 = tpu.matmul %121, %122, %cst_42 {dimension_numbers = #tpu.dot_dimension_numbers<[1], [0], [0], [1], [0, 0, 1, 1], [], []>} : vector<8x24xbf16>, vector<24x256xbf16>, vector<8x256xf32> -> vector<8x256xf32>
    %124 = arith.addf %109, %123 : vector<8x256xf32>
    %c0_43 = arith.constant 0 : index
    %c0_44 = arith.constant 0 : index
    %125 = vector.load %arg6[%c0_43, %c0_44] : memref<8x1xf32, #tpu.memory_space<vmem>>, vector<8x1xf32>
    %126 = vector.broadcast %125 : vector<8x1xf32> to vector<8x256xf32>
    %127 = arith.mulf %124, %126 : vector<8x256xf32>
    %c0_45 = arith.constant 0 : index
    %c0_46 = arith.constant 0 : index
    %128 = vector.load %arg7[%c0_45, %c0_46] : memref<8x1xf32, #tpu.memory_space<vmem>>, vector<8x1xf32>
    %129 = vector.broadcast %128 : vector<8x1xf32> to vector<8x256xf32>
    %130 = arith.addf %127, %129 : vector<8x256xf32>
    %131 = arith.addf %130, %0 : vector<8x256xf32>
    %cst_47 = arith.constant 0.000000e+00 : f32
    %132 = vector.broadcast %cst_47 : f32 to vector<8x256xf32>
    %133 = arith.maximumf %131, %132 : vector<8x256xf32>
    %c0_48 = arith.constant 0 : index
    %c0_49 = arith.constant 0 : index
    %134 = vector.load %arg8[%c0_48, %c0_49] : memref<8x256xf32, #tpu.memory_space<vmem>>, vector<8x256xf32>
    tpu.vector_store %arg8[%c0_48, %c0_49], %133 {strides = array<i32>} : memref<8x256xf32, #tpu.memory_space<vmem>>, vector<8x256xf32>,
    return
  }
  func.func @transform_0(%arg0: i32) -> (i32, i32) {
    %c0_i32 = arith.constant 0 : i32
    %c0_i32_0 = arith.constant 0 : i32
    return %c0_i32, %arg0 : i32, i32
  }
  func.func @transform_1(%arg0: i32) -> (i32, i32, i32) {
    %c0_i32 = arith.constant 0 : i32
    %c0_i32_0 = arith.constant 0 : i32
    %c0_i32_1 = arith.constant 0 : i32
    %c0_i32_2 = arith.constant 0 : i32
    return %c0_i32, %c0_i32_0, %c0_i32_1 : i32, i32, i32
  }
  func.func @transform_2(%arg0: i32) -> (i32, i32) {
    %c0_i32 = arith.constant 0 : i32
    %c0_i32_0 = arith.constant 0 : i32
    %c0_i32_1 = arith.constant 0 : i32
    return %c0_i32, %c0_i32_0 : i32, i32
  }
  func.func @transform_3(%arg0: i32) -> (i32, i32) {
    %c0_i32 = arith.constant 0 : i32
    %c0_i32_0 = arith.constant 0 : i32
    %c0_i32_1 = arith.constant 0 : i32
    return %c0_i32, %c0_i32_0 : i32, i32
  }
  func.func @transform_4(%arg0: i32) -> (i32, i32, i32) {
    %c0_i32 = arith.constant 0 : i32
    %c0_i32_0 = arith.constant 0 : i32
    %c0_i32_1 = arith.constant 0 : i32
    %c0_i32_2 = arith.constant 0 : i32
    return %c0_i32, %c0_i32_0, %c0_i32_1 : i32, i32, i32
  }
  func.func @transform_5(%arg0: i32) -> (i32, i32) {
    %c0_i32 = arith.constant 0 : i32
    %c0_i32_0 = arith.constant 0 : i32
    %c0_i32_1 = arith.constant 0 : i32
    return %c0_i32, %c0_i32_0 : i32, i32
  }
  func.func @transform_6(%arg0: i32) -> (i32, i32) {
    %c0_i32 = arith.constant 0 : i32
    %c0_i32_0 = arith.constant 0 : i32
    %c0_i32_1 = arith.constant 0 : i32
    return %c0_i32, %c0_i32_0 : i32, i32
  }
  func.func @transform_7(%arg0: i32) -> (i32, i32) {
    %c0_i32 = arith.constant 0 : i32
    %c0_i32_0 = arith.constant 0 : i32
    return %c0_i32, %arg0 : i32, i32
  }
}

module attributes {stable_mosaic.version = 11 : i64} {
  func.func @_basic_block_kernel(%arg0: i32, %arg1: memref<8x256xf32, #tpu.memory_space<vmem>>, %arg2: memref<3x8x24xbf16, #tpu.memory_space<vmem>>, %arg3: memref<8x1xf32, #tpu.memory_space<vmem>>, %arg4: memref<8x1xf32, #tpu.memory_space<vmem>>, %arg5: memref<3x8x24xbf16, #tpu.memory_space<vmem>>, %arg6: memref<8x1xf32, #tpu.memory_space<vmem>>, %arg7: memref<8x1xf32, #tpu.memory_space<vmem>>, %arg8: memref<8x256xf32, #tpu.memory_space<vmem>>) attributes {dimension_semantics = [#tpu.dimension_semantics<parallel>], iteration_bounds = array<i64: 2>, scalar_prefetch = 0 : i64, scratch_operands = 0 : i64, tpu.core_type = #tpu.core_type<tc>, window_params = [{transform_indices = @transform_0, window_bounds = array<i64: 8, 256>}, {pipeline_mode = #tpu.pipeline_mode<synchronous>, transform_indices = @transform_1, window_bounds = array<i64: 3, 8, 24>}, {pipeline_mode = #tpu.pipeline_mode<synchronous>, transform_indices = @transform_2, window_bounds = array<i64: 8, 1>}, {pipeline_mode = #tpu.pipeline_mode<synchronous>, transform_indices = @transform_3, window_bounds = array<i64: 8, 1>}, {pipeline_mode = #tpu.pipeline_mode<synchronous>, transform_indices = @transform_4, window_bounds = array<i64: 3, 8, 24>}, {pipeline_mode = #tpu.pipeline_mode<synchronous>, transform_indices = @transform_5, window_bounds = array<i64: 8, 1>}, {pipeline_mode = #tpu.pipeline_mode<synchronous>, transform_indices = @transform_6, window_bounds = array<i64: 8, 1>}, {transform_indices = @transform_7, window_bounds = array<i64: 8, 256>}]} {
    %c0 = arith.constant 0 : index
    %c0_0 = arith.constant 0 : index
    %0 = vector.load %arg1[%c0, %c0_0] : memref<8x256xf32, #tpu.memory_space<vmem>>, vector<8x256xf32>
    %1 = tpu.iota {dimensions = array<i32: 1>} : vector<1x256xi32>
    %2 = arith.sitofp %1 : vector<1x256xi32> to vector<1x256xf32>
    %cst = arith.constant 2.560000e+02 : f32
    %3 = vector.broadcast %cst : f32 to vector<1x256xf32>
    %4 = arith.divf %2, %3 : vector<1x256xf32>
    %5 = math.floor %4 : vector<1x256xf32>
    %cst_1 = arith.constant 2.560000e+02 : f32
    %6 = vector.broadcast %cst_1 : f32 to vector<1x256xf32>
    %7 = arith.mulf %6, %5 : vector<1x256xf32>
    %8 = arith.subf %2, %7 : vector<1x256xf32>
    %cst_2 = arith.constant 1.600000e+01 : f32
    %9 = vector.broadcast %cst_2 : f32 to vector<1x256xf32>
    %10 = arith.divf %8, %9 : vector<1x256xf32>
    %11 = math.floor %10 : vector<1x256xf32>
    %cst_3 = arith.constant 1.600000e+01 : f32
    %12 = vector.broadcast %cst_3 : f32 to vector<1x256xf32>
    %13 = arith.mulf %12, %11 : vector<1x256xf32>
    %14 = arith.subf %8, %13 : vector<1x256xf32>
    %cst_4 = arith.constant 1.000000e+00 : f32
    %15 = vector.broadcast %cst_4 : f32 to vector<1x256xf32>
    %16 = arith.cmpf oge, %14, %15 : vector<1x256xf32>
    %17 = arith.extui %16 : vector<1x256xi1> to vector<1x256xi32>
    %18 = arith.sitofp %17 : vector<1x256xi32> to vector<1x256xf32>
    %cst_5 = arith.constant 1.400000e+01 : f32
    %19 = vector.broadcast %cst_5 : f32 to vector<1x256xf32>
    %20 = arith.cmpf ole, %14, %19 : vector<1x256xf32>
    %21 = arith.extui %20 : vector<1x256xi1> to vector<1x256xi32>
    %22 = arith.sitofp %21 : vector<1x256xi32> to vector<1x256xf32>
    %cst_6 = arith.constant 1.600000e+01 : f32
    %23 = vector.broadcast %cst_6 : f32 to vector<1x256xf32>
    %24 = arith.cmpf oge, %8, %23 : vector<1x256xf32>
    %25 = arith.extui %24 : vector<1x256xi1> to vector<1x256xi32>
    %26 = arith.sitofp %25 : vector<1x256xi32> to vector<1x256xf32>
    %cst_7 = arith.constant 2.400000e+02 : f32
    %27 = vector.broadcast %cst_7 : f32 to vector<1x256xf32>
    %28 = arith.cmpf olt, %8, %27 : vector<1x256xf32>
    %29 = arith.extui %28 : vector<1x256xi1> to vector<1x256xi32>
    %30 = arith.sitofp %29 : vector<1x256xi32> to vector<1x256xf32>
    %31 = arith.mulf %26, %18 : vector<1x256xf32>
    %32 = arith.mulf %26, %22 : vector<1x256xf32>
    %33 = arith.mulf %30, %18 : vector<1x256xf32>
    %34 = arith.mulf %30, %22 : vector<1x256xf32>
    %c17_i32 = arith.constant 17 : i32
    %35 = tpu.dynamic_rotate %0 by %c17_i32 dim 1 : vector<8x256xf32>, i32 -> vector<8x256xf32>
    %36 = vector.broadcast %31 : vector<1x256xf32> to vector<8x256xf32>
    %37 = arith.mulf %35, %36 : vector<8x256xf32>
    %c16_i32 = arith.constant 16 : i32
    %38 = tpu.dynamic_rotate %0 by %c16_i32 dim 1 : vector<8x256xf32>, i32 -> vector<8x256xf32>
    %39 = vector.broadcast %26 : vector<1x256xf32> to vector<8x256xf32>
    %40 = arith.mulf %38, %39 : vector<8x256xf32>
    %c15_i32 = arith.constant 15 : i32
    %41 = tpu.dynamic_rotate %0 by %c15_i32 dim 1 : vector<8x256xf32>, i32 -> vector<8x256xf32>
    %42 = vector.broadcast %32 : vector<1x256xf32> to vector<8x256xf32>
    %43 = arith.mulf %41, %42 : vector<8x256xf32>
    %44 = tpu.concatenate %37, %40, %43 in 0 : vector<8x256xf32>, vector<8x256xf32>, vector<8x256xf32> -> vector<24x256xf32>
    %c0_8 = arith.constant 0 : index
    %c0_9 = arith.constant 0 : index
    %c0_10 = arith.constant 0 : index
    %45 = vector.load %arg2[%c0_8, %c0_9, %c0_10] : memref<3x8x24xbf16, #tpu.memory_space<vmem>>, vector<1x8x24xbf16>
    %46 = vector.shape_cast %45 : vector<1x8x24xbf16> to vector<8x24xbf16>
    %47 = arith.truncf %44 : vector<24x256xf32> to vector<24x256xbf16>
    %cst_11 = arith.constant dense<0.000000e+00> : vector<8x256xf32>
    %48 = tpu.matmul %46, %47, %cst_11 {dimension_numbers = #tpu.dot_dimension_numbers<[1], [0], [0], [1], [0, 0, 1, 1], [], []>} : vector<8x24xbf16>, vector<24x256xbf16>, vector<8x256xf32> -> vector<8x256xf32>
    %c1_i32 = arith.constant 1 : i32
    %49 = tpu.dynamic_rotate %0 by %c1_i32 dim 1 : vector<8x256xf32>, i32 -> vector<8x256xf32>
    %50 = vector.broadcast %18 : vector<1x256xf32> to vector<8x256xf32>
    %51 = arith.mulf %49, %50 : vector<8x256xf32>
    %c255_i32 = arith.constant 255 : i32
    %52 = tpu.dynamic_rotate %0 by %c255_i32 dim 1 : vector<8x256xf32>, i32 -> vector<8x256xf32>
    %53 = vector.broadcast %22 : vector<1x256xf32> to vector<8x256xf32>
    %54 = arith.mulf %52, %53 : vector<8x256xf32>
    %55 = tpu.concatenate %51, %0, %54 in 0 : vector<8x256xf32>, vector<8x256xf32>, vector<8x256xf32> -> vector<24x256xf32>
    %c1 = arith.constant 1 : index
    %c0_12 = arith.constant 0 : index
    %c0_13 = arith.constant 0 : index
    %56 = vector.load %arg2[%c1, %c0_12, %c0_13] : memref<3x8x24xbf16, #tpu.memory_space<vmem>>, vector<1x8x24xbf16>
    %57 = vector.shape_cast %56 : vector<1x8x24xbf16> to vector<8x24xbf16>
    %58 = arith.truncf %55 : vector<24x256xf32> to vector<24x256xbf16>
    %cst_14 = arith.constant dense<0.000000e+00> : vector<8x256xf32>
    %59 = tpu.matmul %57, %58, %cst_14 {dimension_numbers = #tpu.dot_dimension_numbers<[1], [0], [0], [1], [0, 0, 1, 1], [], []>} : vector<8x24xbf16>, vector<24x256xbf16>, vector<8x256xf32> -> vector<8x256xf32>
    %60 = arith.addf %48, %59 : vector<8x256xf32>
    %c241_i32 = arith.constant 241 : i32
    %61 = tpu.dynamic_rotate %0 by %c241_i32 dim 1 : vector<8x256xf32>, i32 -> vector<8x256xf32>
    %62 = vector.broadcast %33 : vector<1x256xf32> to vector<8x256xf32>
    %63 = arith.mulf %61, %62 : vector<8x256xf32>
    %c240_i32 = arith.constant 240 : i32
    %64 = tpu.dynamic_rotate %0 by %c240_i32 dim 1 : vector<8x256xf32>, i32 -> vector<8x256xf32>
    %65 = vector.broadcast %30 : vector<1x256xf32> to vector<8x256xf32>
    %66 = arith.mulf %64, %65 : vector<8x256xf32>
    %c239_i32 = arith.constant 239 : i32
    %67 = tpu.dynamic_rotate %0 by %c239_i32 dim 1 : vector<8x256xf32>, i32 -> vector<8x256xf32>
    %68 = vector.broadcast %34 : vector<1x256xf32> to vector<8x256xf32>
    %69 = arith.mulf %67, %68 : vector<8x256xf32>
    %70 = tpu.concatenate %63, %66, %69 in 0 : vector<8x256xf32>, vector<8x256xf32>, vector<8x256xf32> -> vector<24x256xf32>
    %c2 = arith.constant 2 : index
    %c0_15 = arith.constant 0 : index
    %c0_16 = arith.constant 0 : index
    %71 = vector.load %arg2[%c2, %c0_15, %c0_16] : memref<3x8x24xbf16, #tpu.memory_space<vmem>>, vector<1x8x24xbf16>
    %72 = vector.shape_cast %71 : vector<1x8x24xbf16> to vector<8x24xbf16>
    %73 = arith.truncf %70 : vector<24x256xf32> to vector<24x256xbf16>
    %cst_17 = arith.constant dense<0.000000e+00> : vector<8x256xf32>
    %74 = tpu.matmul %72, %73, %cst_17 {dimension_numbers = #tpu.dot_dimension_numbers<[1], [0], [0], [1], [0, 0, 1, 1], [], []>} : vector<8x24xbf16>, vector<24x256xbf16>, vector<8x256xf32> -> vector<8x256xf32>
    %75 = arith.addf %60, %74 : vector<8x256xf32>
    %c0_18 = arith.constant 0 : index
    %c0_19 = arith.constant 0 : index
    %76 = vector.load %arg3[%c0_18, %c0_19] : memref<8x1xf32, #tpu.memory_space<vmem>>, vector<8x1xf32>
    %77 = vector.broadcast %76 : vector<8x1xf32> to vector<8x256xf32>
    %78 = arith.mulf %75, %77 : vector<8x256xf32>
    %c0_20 = arith.constant 0 : index
    %c0_21 = arith.constant 0 : index
    %79 = vector.load %arg4[%c0_20, %c0_21] : memref<8x1xf32, #tpu.memory_space<vmem>>, vector<8x1xf32>
    %80 = vector.broadcast %79 : vector<8x1xf32> to vector<8x256xf32>
    %81 = arith.addf %78, %80 : vector<8x256xf32>
    %cst_22 = arith.constant 0.000000e+00 : f32
    %82 = vector.broadcast %cst_22 : f32 to vector<8x256xf32>
    %83 = arith.maximumf %81, %82 : vector<8x256xf32>
    %c17_i32_23 = arith.constant 17 : i32
    %84 = tpu.dynamic_rotate %83 by %c17_i32_23 dim 1 : vector<8x256xf32>, i32 -> vector<8x256xf32>
    %85 = vector.broadcast %31 : vector<1x256xf32> to vector<8x256xf32>
    %86 = arith.mulf %84, %85 : vector<8x256xf32>
    %c16_i32_24 = arith.constant 16 : i32
    %87 = tpu.dynamic_rotate %83 by %c16_i32_24 dim 1 : vector<8x256xf32>, i32 -> vector<8x256xf32>
    %88 = vector.broadcast %26 : vector<1x256xf32> to vector<8x256xf32>
    %89 = arith.mulf %87, %88 : vector<8x256xf32>
    %c15_i32_25 = arith.constant 15 : i32
    %90 = tpu.dynamic_rotate %83 by %c15_i32_25 dim 1 : vector<8x256xf32>, i32 -> vector<8x256xf32>
    %91 = vector.broadcast %32 : vector<1x256xf32> to vector<8x256xf32>
    %92 = arith.mulf %90, %91 : vector<8x256xf32>
    %93 = tpu.concatenate %86, %89, %92 in 0 : vector<8x256xf32>, vector<8x256xf32>, vector<8x256xf32> -> vector<24x256xf32>
    %c0_26 = arith.constant 0 : index
    %c0_27 = arith.constant 0 : index
    %c0_28 = arith.constant 0 : index
    %94 = vector.load %arg5[%c0_26, %c0_27, %c0_28] : memref<3x8x24xbf16, #tpu.memory_space<vmem>>, vector<1x8x24xbf16>
    %95 = vector.shape_cast %94 : vector<1x8x24xbf16> to vector<8x24xbf16>
    %96 = arith.truncf %93 : vector<24x256xf32> to vector<24x256xbf16>
    %cst_29 = arith.constant dense<0.000000e+00> : vector<8x256xf32>
    %97 = tpu.matmul %95, %96, %cst_29 {dimension_numbers = #tpu.dot_dimension_numbers<[1], [0], [0], [1], [0, 0, 1, 1], [], []>} : vector<8x24xbf16>, vector<24x256xbf16>, vector<8x256xf32> -> vector<8x256xf32>
    %c1_i32_30 = arith.constant 1 : i32
    %98 = tpu.dynamic_rotate %83 by %c1_i32_30 dim 1 : vector<8x256xf32>, i32 -> vector<8x256xf32>
    %99 = vector.broadcast %18 : vector<1x256xf32> to vector<8x256xf32>
    %100 = arith.mulf %98, %99 : vector<8x256xf32>
    %c255_i32_31 = arith.constant 255 : i32
    %101 = tpu.dynamic_rotate %83 by %c255_i32_31 dim 1 : vector<8x256xf32>, i32 -> vector<8x256xf32>
    %102 = vector.broadcast %22 : vector<1x256xf32> to vector<8x256xf32>
    %103 = arith.mulf %101, %102 : vector<8x256xf32>
    %104 = tpu.concatenate %100, %83, %103 in 0 : vector<8x256xf32>, vector<8x256xf32>, vector<8x256xf32> -> vector<24x256xf32>
    %c1_32 = arith.constant 1 : index
    %c0_33 = arith.constant 0 : index
    %c0_34 = arith.constant 0 : index
    %105 = vector.load %arg5[%c1_32, %c0_33, %c0_34] : memref<3x8x24xbf16, #tpu.memory_space<vmem>>, vector<1x8x24xbf16>
    %106 = vector.shape_cast %105 : vector<1x8x24xbf16> to vector<8x24xbf16>
    %107 = arith.truncf %104 : vector<24x256xf32> to vector<24x256xbf16>
    %cst_35 = arith.constant dense<0.000000e+00> : vector<8x256xf32>
    %108 = tpu.matmul %106, %107, %cst_35 {dimension_numbers = #tpu.dot_dimension_numbers<[1], [0], [0], [1], [0, 0, 1, 1], [], []>} : vector<8x24xbf16>, vector<24x256xbf16>, vector<8x256xf32> -> vector<8x256xf32>
    %109 = arith.addf %97, %108 : vector<8x256xf32>
    %c241_i32_36 = arith.constant 241 : i32
    %110 = tpu.dynamic_rotate %83 by %c241_i32_36 dim 1 : vector<8x256xf32>, i32 -> vector<8x256xf32>
    %111 = vector.broadcast %33 : vector<1x256xf32> to vector<8x256xf32>
    %112 = arith.mulf %110, %111 : vector<8x256xf32>
    %c240_i32_37 = arith.constant 240 : i32
    %113 = tpu.dynamic_rotate %83 by %c240_i32_37 dim 1 : vector<8x256xf32>, i32 -> vector<8x256xf32>
    %114 = vector.broadcast %30 : vector<1x256xf32> to vector<8x256xf32>
    %115 = arith.mulf %113, %114 : vector<8x256xf32>
    %c239_i32_38 = arith.constant 239 : i32
    %116 = tpu.dynamic_rotate %83 by %c239_i32_38 dim 1 : vector<8x256xf32>, i32 -> vector<8x256xf32>
    %117 = vector.broadcast %34 : vector<1x256xf32> to vector<8x256xf32>
    %118 = arith.mulf %116, %117 : vector<8x256xf32>
    %119 = tpu.concatenate %112, %115, %118 in 0 : vector<8x256xf32>, vector<8x256xf32>, vector<8x256xf32> -> vector<24x256xf32>
    %c2_39 = arith.constant 2 : index
    %c0_40 = arith.constant 0 : index
    %c0_41 = arith.constant 0 : index
    %120 = vector.load %arg5[%c2_39, %c0_40, %c0_41] : memref<3x8x24xbf16, #tpu.memory_space<vmem>>, vector<1x8x24xbf16>
    %121 = vector.shape_cast %120 : vector<1x8x24xbf16> to vector<8x24xbf16>
    %122 = arith.truncf %119 : vector<24x256xf32> to vector<24x256xbf16>
    %cst_42 = arith.constant dense<0.000000e+00> : vector<8x256xf32>
    %123 = tpu.matmul %121, %122, %cst_42 {dimension_numbers = #tpu.dot_dimension_numbers<[1], [0], [0], [1], [0, 0, 1, 1], [], []>} : vector<8x24xbf16>, vector<24x256xbf16>, vector<8x256xf32> -> vector<8x256xf32>
    %124 = arith.addf %109, %123 : vector<8x256xf32>
    %c0_43 = arith.constant 0 : index
    %c0_44 = arith.constant 0 : index
    %125 = vector.load %arg6[%c0_43, %c0_44] : memref<8x1xf32, #tpu.memory_space<vmem>>, vector<8x1xf32>
    %126 = vector.broadcast %125 : vector<8x1xf32> to vector<8x256xf32>
    %127 = arith.mulf %124, %126 : vector<8x256xf32>
    %c0_45 = arith.constant 0 : index
    %c0_46 = arith.constant 0 : index
    %128 = vector.load %arg7[%c0_45, %c0_46] : memref<8x1xf32, #tpu.memory_space<vmem>>, vector<8x1xf32>
    %129 = vector.broadcast %128 : vector<8x1xf32> to vector<8x256xf32>
    %130 = arith.addf %127, %129 : vector<8x256xf32>
    %131 = arith.addf %130, %0 : vector<8x256xf32>
    %cst_47 = arith.constant 0.000000e+00 : f32
    %132 = vector.broadcast %cst_47 : f32 to vector<8x256xf32>
    %133 = arith.maximumf %131, %132 : vector<8x256xf32>
    %c0_48 = arith.constant 0 : index
    %c0_49 = arith.constant 0 : index
    %134 = vector.load %arg8[%c0_48, %c0_49] : memref<8x256xf32, #tpu.memory_space<vmem>>, vector<8x256xf32>
    tpu.vector_store %arg8[%c0_48, %c0_49], %133 {strides = array<i32>} : memref<8x256xf32, #tpu.memory_space<vmem>>, vector<8x256xf32>,
    return
  }
  func.func @transform_0(%arg0: i32) -> (i32, i32) {
    %c0_i32 = arith.constant 0 : i32
    %c0_i32_0 = arith.constant 0 : i32
    return %c0_i32, %arg0 : i32, i32
  }
  func.func @transform_1(%arg0: i32) -> (i32, i32, i32) {
    %c0_i32 = arith.constant 0 : i32
    %c0_i32_0 = arith.constant 0 : i32
    %c0_i32_1 = arith.constant 0 : i32
    %c0_i32_2 = arith.constant 0 : i32
    return %c0_i32, %c0_i32_0, %c0_i32_1 : i32, i32, i32
  }
  func.func @transform_2(%arg0: i32) -> (i32, i32) {
    %c0_i32 = arith.constant 0 : i32
    %c0_i32_0 = arith.constant 0 : i32
    %c0_i32_1 = arith.constant 0 : i32
    return %c0_i32, %c0_i32_0 : i32, i32
  }
  func.func @transform_3(%arg0: i32) -> (i32, i32) {
    %c0_i32 = arith.constant 0 : i32
    %c0_i32_0 = arith.constant 0 : i32
    %c0_i32_1 = arith.constant 0 : i32
    return %c0_i32, %c0_i32_0 : i32, i32
  }
  func.func @transform_4(%arg0: i32) -> (i32, i32, i32) {
    %c0_i32 = arith.constant 0 : i32
    %c0_i32_0 = arith.constant 0 : i32
    %c0_i32_1 = arith.constant 0 : i32
    %c0_i32_2 = arith.constant 0 : i32
    return %c0_i32, %c0_i32_0, %c0_i32_1 : i32, i32, i32
  }
  func.func @transform_5(%arg0: i32) -> (i32, i32) {
    %c0_i32 = arith.constant 0 : i32
    %c0_i32_0 = arith.constant 0 : i32
    %c0_i32_1 = arith.constant 0 : i32
    return %c0_i32, %c0_i32_0 : i32, i32
  }
  func.func @transform_6(%arg0: i32) -> (i32, i32) {
    %c0_i32 = arith.constant 0 : i32
    %c0_i32_0 = arith.constant 0 : i32
    %c0_i32_1 = arith.constant 0 : i32
    return %c0_i32, %c0_i32_0 : i32, i32
  }
  func.func @transform_7(%arg0: i32) -> (i32, i32) {
    %c0_i32 = arith.constant 0 : i32
    %c0_i32_0 = arith.constant 0 : i32
    return %c0_i32, %arg0 : i32, i32
  }
}

</mosaic_0001>

<bundles_post_ra>
// kernel: basic_block_forward.1
= control target key start
LH: loop header
LB: loop body
LE: loop exit
PB: predicated region body
PF: predicated region fallthrough
CT: control target
= control target key end

     0   :  { %s1041_s24 = smov 0   ;;  %s1347_s0 = inlined_call_operand.vmem [shape: f32[8,512], index: 0, kind: input, shape index: {}]   ;;  %s1348_s1 = inlined_call_operand.vmem [shape: bf16[3,8,24], index: 1, kind: input, shape index: {}]   ;;  %s1349_s2 = inlined_call_operand.vmem [shape: f32[8,1], index: 2, kind: input, shape index: {}]   ;;  %s1350_s3 = inlined_call_operand.vmem [shape: f32[8,1], index: 3, kind: input, shape index: {}]   ;;  %s1351_s4 = inlined_call_operand.vmem [shape: bf16[3,8,24], index: 4, kind: input, shape index: {}]   ;;  %s1352_s5 = inlined_call_operand.vmem [shape: f32[8,1], index: 5, kind: input, shape index: {}]   ;;  %s1353_s6 = inlined_call_operand.vmem [shape: f32[8,1], index: 6, kind: input, shape index: {}]   ;;  %s1354_s7 = inlined_call_operand.vmem [shape: f32[8,512], index: 7, kind: output, shape index: {}]  }
   0x1 LB: > { %s912_s25 = sadd.s32 4294967295, %s989_s24   ;;  %p916_p0 = scmp.ge.s32.totalorder %s989_s24, 1  ;;  %s989_s24 = sphi %s1041_s24, %s17_s24  }
   0x2   : > { %p238_p1 = scmp.lt.s32.totalorder %s989_s24, 3 }
   0x4   : > { %p239_p2 = pnand %p916_p0, %p238_p1 }
   0x5   : > { %s917_s26 = sshll.u32 (!%p239_p2), %s912_s25, 1  ;;  %s991_s8 = smov (!%p239_p2), 127   ;;  %v993_v2 = vmov (!%p239_p2), 0   ;;  %v583_v3 = vld [vmem:[%s1349_s2] sm:$0xff] (!%p239_p2)  ;;  %v285_v5 = vlaneseq (!%p239_p2)  ;;  %v1000_v28 = vmov (!%p239_p2), 0.0   ;;  %vm400_vm10 = vcmask (!%p239_p2), 1043456  }
   0x6   : > { %242 = sbr.rel (%p239_p2) target bundleno = 766 (0x2fe), region = 48  ;;  %p271_p3 = scmp.lt.s32.totalorder (!%p239_p2), %s917_s26, 3  ;;  %439 = vmatprep.mubr.bf16.mxu0 (!%p239_p2), %v993_v2  ;;  %981 = vset.pattern.permute.xlu0 (!%p239_p2), %v993_v2  ;;  %v591_v4 = vld [vmem:[%s1350_s3] sm:$0xff] (!%p239_p2)  ;;  %vm396_vm14 = vcmask (!%p239_p2), 195584  }
   0x7   : > { %s992_s9 = smov (!%p239_p2), 1   ;;  %982 = vset.pattern.permute.xlu1 (!%p239_p2), %v993_v2  ;;  %693 = vmatprep.mubr.bf16.mxu1 (!%p239_p2), %v993_v2  ;;  %s994_s10 = smov (!%p239_p2), 17   ;;  %v1103_v6 = vand.u32 (!%p239_p2), 127, %v285_v5  ;;  %v929_v5 = vld [vmem:[%s1348_s1 + $0x4] sm:$0xf] (!%p239_p2) }
   0x8   : > { %s995_s11 = smov (!%p239_p2), 16   ;;  %s996_s12 = smov (!%p239_p2), 15  }
   0x9   : > { %s997_s13 = smov (!%p239_p2), 113   ;;  %s998_s14 = smov (!%p239_p2), 112   ;;  %v287_v7 = vadd.s32 (!%p239_p2), 128, %v1103_v6  ;;  %v288_v8 = vcvt.s32.f32 (!%p239_p2), %v1103_v6  ;;  %vm385_vm6 = vcmp.lt.s32.totalorder (!%p239_p2), %v1103_v6, 127  ;;  %vm376_vm7 = vcmp.lt.s32.totalorder (!%p239_p2), %v1103_v6, 1 }
   0xa   : > { %s999_s15 = smov (!%p239_p2), 111   ;;  %vm344_vm8 = vcmp.lt.s32.totalorder (!%p239_p2), %v1103_v6, 17  ;;  %vm353_vm9 = vcmp.lt.s32.totalorder (!%p239_p2), %v1103_v6, 16  ;;  %vm362_vm11 = vcmp.lt.s32.totalorder (!%p239_p2), %v1103_v6, 15  ;;  %vm502_vm15 = vcmp.lt.s32.totalorder (!%p239_p2), %v1103_v6, 113 }
   0xb   : > { %v289_v9 = vcvt.s32.f32 (!%p239_p2), %v287_v7  ;;  %v291_v10 = vmul.f32 (!%p239_p2), 0.00390625, %v288_v8 }
   0xd   : > { %s1356_s26 = smov (!%p271_p3, %s917_s26), 3  ;;  %v292_v11 = vmul.f32 0.00390625, %v289_v9  ;;  %v293_v12 = vfloor.f32 %v291_v10 }
   0xe   : > { %s918_s27 = sshll.u32 %s1356_s26, 3 }
   0xf   : > { %s274_s30 = scalar_lea.vmem %s1347_s0, %s918_s27  ;;  %v294_v13 = vfloor.f32 %v292_v11  ;;  %v295_v14 = vmul.f32 256.0, %v293_v12  ;;  %s280_s18 = scalar_lea.vmem %s1354_s7, %s918_s27 }
  0x10   : > { %v1057_v0 = vld [vmem:[%s274_s30] sm:$0xff]  ;;  %v1063_v1 = vld [vmem:[%s274_s30 + $0x8] sm:$0xff] }
  0x11   : > { %381 = vrot.lane.b32.xlu1 %v1057_v0, %s991_s8  ;;  %372 = vrot.lane.b32.xlu0 %v1057_v0, %s992_s9  ;;  %v296_v15 = vmul.f32 256.0, %v294_v13  ;;  %v1107_v16 = vsub.f32 %v288_v8, %v295_v14 }
  0x13   : > { %v1109_v17 = vsub.f32 %v289_v9, %v296_v15  ;;  %v300_v18 = vmul.f32 0.0625, %v1107_v16  ;;  %vm320_vm4 = vcmp.ge.f32.partialorder %v1107_v16, 16.0  ;;  %vm326_vm12 = vcmp.lt.f32.partialorder %v1107_v16, 240.0 }
  0x14   : > { %v1127_v35 = vsel %vm320_vm4, 1.0, %v1000_v28  ;;  %v1189_v13 = vsel %vm326_vm12, 1.0, %v1000_v28 }
  0x15   : > { %383 = vrot.lane.b32.xlu1 %v1063_v1, %s991_s8  ;;  %374 = vrot.lane.b32.xlu0 %v1063_v1, %s992_s9  ;;  %v301_v19 = vmul.f32 0.0625, %v1109_v17  ;;  %v302_v20 = vfloor.f32 %v300_v18  ;;  %vm321_vm5 = vcmp.ge.f32.partialorder %v1109_v17, 16.0  ;;  %vm327_vm13 = vcmp.lt.f32.partialorder %v1109_v17, 240.0 }
  0x16   : > { %v1129_v36 = vsel %vm321_vm5, 1.0, %v1000_v28  ;;  %v1191_v14 = vsel %vm327_vm13, 1.0, %v1000_v28 }
  0x17   : > { %v303_v21 = vfloor.f32 %v301_v19  ;;  %v304_v22 = vmul.f32 16.0, %v302_v20 }
  0x19   : > { %342 = vrot.lane.b32.xlu1 %v1063_v1, %s994_s10  ;;  %340 = vrot.lane.b32.xlu0 %v1057_v0, %s994_s10  ;;  %v305_v23 = vmul.f32 16.0, %v303_v21  ;;  %v306_v24 = vsub.f32 %v1107_v16, %v304_v22 }
  0x1b   : > { %v307_v25 = vsub.f32 %v1109_v17, %v305_v23  ;;  %vm314_vm0 = vcmp.le.f32.partialorder %v306_v24, 14.0  ;;  %vm308_vm2 = vcmp.ge.f32.partialorder %v306_v24, 1.0 }
  0x1c   : > { %v1119_v29 = vsel %vm314_vm0, 1.0, %v1000_v28  ;;  %v1123_v31 = vsel %vm308_vm2, 1.0, %v1000_v28  ;;  %vm511_vm0 = vcmp.lt.s32.totalorder %v1103_v6, 112 }
  0x1d   : > { %351 = vrot.lane.b32.xlu1 %v1063_v1, %s995_s11  ;;  %349 = vrot.lane.b32.xlu0 %v1057_v0, %s995_s11  ;;  %vm315_vm1 = vcmp.le.f32.partialorder %v307_v25, 14.0  ;;  %vm309_vm3 = vcmp.ge.f32.partialorder %v307_v25, 1.0  ;;  %v1146_v46 = vmul.f32 %v1127_v35, %v1123_v31  ;;  %v1170_v61 = vmul.f32 %v1127_v35, %v1119_v29 }
  0x1e   : > { %v1121_v30 = vsel %vm315_vm1, 1.0, %v1000_v28  ;;  %v1125_v32 = vsel %vm309_vm3, 1.0, %v1000_v28  ;;  %v1200_v16 = vmul.f32 %v1189_v13, %v1123_v31  ;;  %vm520_vm1 = vcmp.lt.s32.totalorder %v1103_v6, 111 }
  0x1f   : > { %v1150_v47 = vmul.f32 %v1129_v36, %v1125_v32  ;;  %v1204_v21 = vmul.f32 %v1191_v14, %v1125_v32 }
  0x21   : > { %360 = vrot.lane.b32.xlu1 %v1063_v1, %s996_s12  ;;  %358 = vrot.lane.b32.xlu0 %v1057_v0, %s996_s12 }
  0x25   : > { %500 = vrot.lane.b32.xlu1 %v1063_v1, %s997_s13  ;;  %498 = vrot.lane.b32.xlu0 %v1057_v0, %s997_s13 }
  0x29   : > { %509 = vrot.lane.b32.xlu1 %v1063_v1, %s998_s14  ;;  %507 = vrot.lane.b32.xlu0 %v1057_v0, %s998_s14 }
  0x2d   : > { %518 = vrot.lane.b32.xlu1 %v1063_v1, %s999_s15  ;;  %516 = vrot.lane.b32.xlu0 %v1057_v0, %s999_s15 }
  0x31   : > { %586 = vperm.xlu0 %981, %v583_v3   ;;  %594 = vperm.xlu1 %982, %v591_v4   ;;  %v1178_v4 = vmul.f32 %v1129_v36, %v1121_v30 }
  0x83   : > { %v382_v26 = vpop.permute.xlu1 %381  ;;  %v373_v27 = vpop.permute.xlu0 %372 }
  0x87   : > { %v384_v33 = vpop.permute.xlu1 %383  ;;  %v375_v34 = vpop.permute.xlu0 %374 }
  0x88   : > { %v386_v37 = vsel %vm385_vm6, %v382_v26, %v384_v33  ;;  %v387_v38 = vsel %vm385_vm6, %v384_v33, %v382_v26  ;;  %v377_v39 = vsel %vm376_vm7, %v373_v27, %v375_v34  ;;  %v378_v40 = vsel %vm376_vm7, %v375_v34, %v373_v27 }
  0x89   : > { %v388_v41 = vmul.f32 %v1119_v29, %v386_v37  ;;  %v389_v42 = vmul.f32 %v1121_v30, %v387_v38  ;;  %v379_v43 = vmul.f32 %v1123_v31, %v378_v40  ;;  %v380_v44 = vmul.f32 %v1125_v32, %v377_v39 }
  0x8a   : > { %v1221_v38 = vmul.f32 %v1189_v13, %v1119_v29 }
  0x8b   : > { %v343_v45 = vpop.permute.xlu1 %342  ;;  %v341_v48 = vpop.permute.xlu0 %340  ;;  %v393_v49 = vpack.c.bf16 %v1063_v1, %v380_v44  ;;  %v392_v50 = vpack.c.bf16 %v1057_v0, %v379_v43  ;;  %v394_v53 = vpack.c.bf16 %v388_v41, %v388_v41  ;;  %v395_v54 = vpack.c.bf16 %v389_v42, %v389_v42  ;;  %v367_v42 = vld [vmem:[%s1348_s1] sm:$0xf] }
  0x8c   : > { %v345_v51 = vsel %vm344_vm8, %v341_v48, %v343_v45  ;;  %v346_v52 = vsel %vm344_vm8, %v343_v45, %v341_v48  ;;  %v1227_v41 = vmul.f32 %v1191_v14, %v1121_v30 }
  0x8d   : > { %407 = vmatprep.subr.bf16.mxu0 %v393_v49  ;;  %v347_v55 = vmul.f32 %v346_v52, %v1146_v46  ;;  %v348_v56 = vmul.f32 %v345_v51, %v1150_v47  ;;  %v402_v3 = vsel %vm400_vm10, %v394_v53, 0 }
  0x8e   : > { %408 = vmatpush1.bf16.msra.mxu0 %v392_v50 }
  0x8f   : > { %v352_v57 = vpop.permute.xlu1 %351  ;;  %930 = vmatprep.subr.msk.bf16.mxu0 %vm400_vm10, %v395_v54  ;;  %v350_v58 = vpop.permute.xlu0 %349 }
  0x90   : > { %v354_v59 = vsel %vm353_vm9, %v350_v58, %v352_v57  ;;  %v355_v60 = vsel %vm353_vm9, %v352_v57, %v350_v58 }
  0x91   : > { %v356_v62 = vmul.f32 %v1127_v35, %v355_v60  ;;  %v357_v63 = vmul.f32 %v1129_v36, %v354_v59 }
  0x92   : > { %410 = vmatpush1.bf16.msra.mxu0 %v402_v3 }
  0x93   : > { %v368_v7 = vpack.c.bf16 %v356_v62, %v347_v55  ;;  %v361_v8 = vpop.permute.xlu1 %360  ;;  %v359_v9 = vpop.permute.xlu0 %358  ;;  %v369_v10 = vpack.c.bf16 %v357_v63, %v348_v56  ;;  %v934_v56 = vld [vmem:[%s1348_s1 + $0x8] sm:$0xf] }
  0x94   : > { %v363_v11 = vsel %vm362_vm11, %v359_v9, %v361_v8  ;;  %v364_v12 = vsel %vm362_vm11, %v361_v8, %v359_v9 }
  0x95   : > { %v365_v15 = vmul.f32 %v364_v12, %v1170_v61  ;;  %v366_v17 = vmul.f32 %v363_v11, %v1178_v4  ;;  %931 = vmatmul.mubr.msk.bf16.vlgmr.msra.gmra.mrb[0].mxu0 %vm396_vm14, %v929_v5  ;;  %457 = vmatprep.subr.bf16.mxu0 %v369_v10  ;;  %v834_v11 = vld [vmem:[%s1352_s5] sm:$0xff] }
  0x96   : > { %458 = vmatpush1.bf16.msra.mxu0 %v368_v7  ;;  %489 = vmatprep.mubr.bf16.mxu0 %v993_v2  ;;  %v842_v12 = vld [vmem:[%s1353_s6] sm:$0xff] }
  0x97   : > { %v370_v18 = vpack.c.bf16 %v365_v15, %v365_v15  ;;  %v371_v19 = vpack.c.bf16 %v366_v17, %v366_v17  ;;  %v501_v20 = vpop.permute.xlu1 %500  ;;  %v499_v22 = vpop.permute.xlu0 %498 }
  0x98   : > { %v503_v23 = vsel %vm502_vm15, %v499_v22, %v501_v20  ;;  %v504_v24 = vsel %vm502_vm15, %v501_v20, %v499_v22 }
  0x99   : > { %932 = vmatprep.subr.msk.bf16.mxu0 %vm400_vm10, %v371_v19  ;;  %v452_v25 = vsel %vm400_vm10, %v370_v18, 0  ;;  %v505_v26 = vmul.f32 %v503_v23, %v1200_v16  ;;  %v506_v27 = vmul.f32 %v504_v24, %v1204_v21 }
  0x9a   : > { %460 = vmatpush1.bf16.msra.mxu0 %v452_v25 }
  0x9b   : > { %v510_v28 = vpop.permute.xlu1 %509  ;;  %v508_v33 = vpop.permute.xlu0 %507 }
  0x9c   : > { %v512_v34 = vsel %vm511_vm0, %v508_v33, %v510_v28  ;;  %v513_v37 = vsel %vm511_vm0, %v510_v28, %v508_v33 }
  0x9d   : > { %v514_v39 = vmul.f32 %v1189_v13, %v512_v34  ;;  %v515_v40 = vmul.f32 %v1191_v14, %v513_v37 }
  0x9f   : > { %v527_v43 = vpack.c.bf16 %v514_v39, %v505_v26  ;;  %v528_v44 = vpack.c.bf16 %v515_v40, %v506_v27  ;;  %v519_v45 = vpop.permute.xlu1 %518  ;;  %v517_v48 = vpop.permute.xlu0 %516 }
  0xa0   : > { %v521_v49 = vsel %vm520_vm1, %v517_v48, %v519_v45  ;;  %v522_v50 = vsel %vm520_vm1, %v519_v45, %v517_v48 }
  0xa1   : > { %933 = vmatmul.mubr.msk.bf16.vlgmr.msra.gmra.mrb[0].mxu0 %vm396_vm14, %v367_v42  ;;  %540 = vmatprep.subr.bf16.mxu0 %v528_v44  ;;  %v523_v51 = vmul.f32 %v521_v49, %v1221_v38  ;;  %v524_v52 = vmul.f32 %v522_v50, %v1227_v41 }
  0xa2   : > { %541 = vmatpush1.bf16.msra.mxu0 %v527_v43  ;;  %572 = vmatprep.mubr.bf16.mxu0 %v993_v2 }
  0xa3   : > { %v529_v53 = vpack.c.bf16 %v523_v51, %v523_v51  ;;  %v530_v54 = vpack.c.bf16 %v524_v52, %v524_v52 }
  0xa5   : > { %935 = vmatprep.subr.msk.bf16.mxu0 %vm400_vm10, %v530_v54  ;;  %v535_v55 = vsel %vm400_vm10, %v529_v53, 0 }
  0xa6   : > { %543 = vmatpush1.bf16.msra.mxu0 %v535_v55 }
  0xad   : > { %936 = vmatmul.mubr.msk.bf16.vlgmr.msra.gmra.mrb[0].mxu0 %vm396_vm14, %v934_v56 }
  0xb0   : > { %v587_v57 = vpop.permute.xlu0 %586  ;;  %v595_v59 = vpop.permute.xlu1 %594 }
 0x180   : > { %v574_v58 = vpop.f32.mrb[0].mxu0 }
 0x181   : > { %v589_v60 = vmul.f32 %v587_v57, %v574_v58  ;;  %v576_v62 = vpop.f32.mrb[1].mxu0 }
 0x182   : > { %v590_v63 = vmul.f32 %v587_v57, %v576_v62  ;;  %v578_v3 = vpop.f32.mrb[2].mxu0 }
 0x183   : > { %v597_v5 = vadd.f32 %v595_v59, %v589_v60  ;;  %v579_v7 = vpop.f32.mrb[3].mxu0 }
 0x184   : > { %v598_v8 = vadd.f32 %v595_v59, %v590_v63 }
 0x185   : > { %v599_v9 = vmax.f32 %v597_v5, 0.0 }
 0x186   : > { %v600_v10 = vmax.f32 %v598_v8, 0.0 }
 0x187   : > { %630 = vrot.lane.b32.xlu1 %v599_v9, %s992_s9 }
 0x188   : > { %632 = vrot.lane.b32.xlu0 %v600_v10, %s992_s9 }
 0x18b   : > { %638 = vrot.lane.b32.xlu1 %v599_v9, %s991_s8 }
 0x18c   : > { %640 = vrot.lane.b32.xlu0 %v600_v10, %s991_s8 }
 0x18f   : > { %601 = vrot.lane.b32.xlu1 %v599_v9, %s994_s10 }
 0x190   : > { %603 = vrot.lane.b32.xlu0 %v600_v10, %s994_s10 }
 0x193   : > { %609 = vrot.lane.b32.xlu1 %v599_v9, %s995_s11 }
 0x194   : > { %611 = vrot.lane.b32.xlu0 %v600_v10, %s995_s11 }
 0x197   : > { %617 = vrot.lane.b32.xlu1 %v599_v9, %s996_s12 }
 0x198   : > { %619 = vrot.lane.b32.xlu0 %v600_v10, %s996_s12 }
 0x19b   : > { %752 = vrot.lane.b32.xlu1 %v599_v9, %s997_s13 }
 0x19c   : > { %754 = vrot.lane.b32.xlu0 %v600_v10, %s997_s13 }
 0x19f   : > { %760 = vrot.lane.b32.xlu1 %v599_v9, %s998_s14 }
 0x1a0   : > { %762 = vrot.lane.b32.xlu0 %v600_v10, %s998_s14 }
 0x1a3   : > { %768 = vrot.lane.b32.xlu1 %v599_v9, %s999_s15 }
 0x1a4   : > { %770 = vrot.lane.b32.xlu0 %v600_v10, %s999_s15 }
 0x1a7   : > { %837 = vperm.xlu1 %982, %v834_v11  }
 0x1a8   : > { %845 = vperm.xlu0 %981, %v842_v12  }
 0x1f9   : > { %v631_v15 = vpop.permute.xlu1 %630 }
 0x1fa   : > { %v633_v17 = vpop.permute.xlu0 %632 }
 0x1fb   : > { %v634_v18 = vsel %vm376_vm7, %v631_v15, %v633_v17  ;;  %v635_v19 = vsel %vm376_vm7, %v633_v17, %v631_v15 }
 0x1fc   : > { %v636_v20 = vmul.f32 %v1123_v31, %v635_v19  ;;  %v637_v22 = vmul.f32 %v1125_v32, %v634_v18 }
 0x1fd   : > { %v639_v23 = vpop.permute.xlu1 %638 }
 0x1fe   : > { %v641_v24 = vpop.permute.xlu0 %640  ;;  %v649_v25 = vpack.c.bf16 %v600_v10, %v637_v22  ;;  %v648_v26 = vpack.c.bf16 %v599_v9, %v636_v20 }
 0x1ff   : > { %v642_v27 = vsel %vm385_vm6, %v639_v23, %v641_v24  ;;  %v643_v28 = vsel %vm385_vm6, %v641_v24, %v639_v23  ;;  %v942_v23 = vld [vmem:[%s1351_s4 + $0x8] sm:$0xf] }
 0x200   : > { %v644_v33 = vmul.f32 %v1119_v29, %v642_v27  ;;  %v645_v34 = vmul.f32 %v1121_v30, %v643_v28  ;;  %661 = vmatprep.subr.bf16.mxu1 %v649_v25  ;;  %v937_v30 = vld [vmem:[%s1351_s4 + $0x4] sm:$0xf] }
 0x201   : > { %662 = vmatpush1.bf16.msra.mxu1 %v648_v26  ;;  %v602_v37 = vpop.permute.xlu1 %601 }
 0x202   : > { %v650_v31 = vpack.c.bf16 %v644_v33, %v644_v33  ;;  %v651_v39 = vpack.c.bf16 %v645_v34, %v645_v34  ;;  %v604_v32 = vpop.permute.xlu0 %603 }
 0x203   : > { %v605_v42 = vsel %vm344_vm8, %v602_v37, %v604_v32  ;;  %v606_v43 = vsel %vm344_vm8, %v604_v32, %v602_v37 }
 0x204   : > { %938 = vmatprep.subr.msk.bf16.mxu1 %vm400_vm10, %v651_v39  ;;  %v656_v40 = vsel %vm400_vm10, %v650_v31, 0  ;;  %v607_v49 = vmul.f32 %v606_v43, %v1146_v46  ;;  %v608_v50 = vmul.f32 %v605_v42, %v1150_v47 }
 0x205   : > { %664 = vmatpush1.bf16.msra.mxu1 %v656_v40  ;;  %v610_v29 = vpop.permute.xlu1 %609 }
 0x206   : > { %v612_v44 = vpop.permute.xlu0 %611 }
 0x207   : > { %v613_v45 = vsel %vm353_vm9, %v610_v29, %v612_v44  ;;  %v614_v48 = vsel %vm353_vm9, %v612_v44, %v610_v29 }
 0x208   : > { %v615_v51 = vmul.f32 %v1127_v35, %v614_v48  ;;  %v616_v52 = vmul.f32 %v1129_v36, %v613_v45  ;;  %939 = vmatmul.mubr.msk.bf16.vlgmr.msra.gmra.mrb[0].mxu1 %vm396_vm14, %v937_v30 }
 0x209   : > { %v618_v53 = vpop.permute.xlu1 %617  ;;  %743 = vmatprep.mubr.bf16.mxu1 %v993_v2 }
 0x20a   : > { %v626_v54 = vpack.c.bf16 %v615_v51, %v607_v49  ;;  %v620_v55 = vpop.permute.xlu0 %619  ;;  %v627_v56 = vpack.c.bf16 %v616_v52, %v608_v50 }
 0x20b   : > { %v621_v57 = vsel %vm362_vm11, %v618_v53, %v620_v55  ;;  %v622_v46 = vsel %vm362_vm11, %v620_v55, %v618_v53 }
 0x20c   : > { %v623_v47 = vmul.f32 %v622_v46, %v1170_v61  ;;  %v624_v35 = vmul.f32 %v621_v57, %v1178_v4  ;;  %711 = vmatprep.subr.bf16.mxu1 %v627_v56  ;;  %v625_v4 = vld [vmem:[%s1351_s4] sm:$0xf] }
 0x20d   : > { %712 = vmatpush1.bf16.msra.mxu1 %v626_v54  ;;  %v753_v36 = vpop.permute.xlu1 %752 }
 0x20e   : > { %v628_v58 = vpack.c.bf16 %v623_v47, %v623_v47  ;;  %v629_v59 = vpack.c.bf16 %v624_v35, %v624_v35  ;;  %v755_v60 = vpop.permute.xlu0 %754 }
 0x20f   : > { %v756_v63 = vsel %vm502_vm15, %v753_v36, %v755_v60  ;;  %v757_v3 = vsel %vm502_vm15, %v755_v60, %v753_v36 }
 0x210   : > { %940 = vmatprep.subr.msk.bf16.mxu1 %vm400_vm10, %v629_v59  ;;  %v706_v62 = vsel %vm400_vm10, %v628_v58, 0  ;;  %v758_v9 = vmul.f32 %v756_v63, %v1200_v16  ;;  %v759_v10 = vmul.f32 %v757_v3, %v1204_v21 }
 0x211   : > { %714 = vmatpush1.bf16.msra.mxu1 %v706_v62  ;;  %v761_v61 = vpop.permute.xlu1 %760 }
 0x212   : > { %v763_v5 = vpop.permute.xlu0 %762 }
 0x213   : > { %v764_v7 = vsel %vm511_vm0, %v761_v61, %v763_v5  ;;  %v765_v8 = vsel %vm511_vm0, %v763_v5, %v761_v61 }
 0x214   : > { %v766_v11 = vmul.f32 %v1189_v13, %v764_v7  ;;  %v767_v12 = vmul.f32 %v1191_v14, %v765_v8  ;;  %941 = vmatmul.mubr.msk.bf16.vlgmr.msra.gmra.mrb[0].mxu1 %vm396_vm14, %v625_v4 }
 0x215   : > { %v769_v15 = vpop.permute.xlu1 %768  ;;  %823 = vmatprep.mubr.bf16.mxu1 %v993_v2 }
 0x216   : > { %v778_v17 = vpack.c.bf16 %v766_v11, %v758_v9  ;;  %v771_v18 = vpop.permute.xlu0 %770  ;;  %v779_v19 = vpack.c.bf16 %v767_v12, %v759_v10 }
 0x217   : > { %v772_v20 = vsel %vm520_vm1, %v769_v15, %v771_v18  ;;  %v773_v16 = vsel %vm520_vm1, %v771_v18, %v769_v15 }
 0x218   : > { %v774_v21 = vmul.f32 %v772_v20, %v1221_v38  ;;  %v775_v13 = vmul.f32 %v773_v16, %v1227_v41  ;;  %791 = vmatprep.subr.bf16.mxu1 %v779_v19 }
 0x219   : > { %792 = vmatpush1.bf16.msra.mxu1 %v778_v17 }
 0x21a   : > { %v780_v14 = vpack.c.bf16 %v774_v21, %v774_v21  ;;  %v781_v22 = vpack.c.bf16 %v775_v13, %v775_v13 }
 0x21c   : > { %943 = vmatprep.subr.msk.bf16.mxu1 %vm400_vm10, %v781_v22  ;;  %v786_v2 = vsel %vm400_vm10, %v780_v14, 0 }
 0x21d   : > { %794 = vmatpush1.bf16.msra.mxu1 %v786_v2 }
 0x220   : > { %944 = vmatmul.mubr.msk.bf16.vlgmr.msra.gmra.mrb[0].mxu1 %vm396_vm14, %v942_v23 }
 0x226   : > { %v838_v6 = vpop.permute.xlu1 %837 }
 0x227   : > { %v846_v25 = vpop.permute.xlu0 %845 }
 0x2f3   : > { %v825_v38 = vpop.f32.mrb[0].mxu1 }
 0x2f4   : > { %v840_v24 = vmul.f32 %v838_v6, %v825_v38  ;;  %v827_v41 = vpop.f32.mrb[1].mxu1 }
 0x2f5   : > { %v841_v26 = vmul.f32 %v838_v6, %v827_v41  ;;  %v829_v27 = vpop.f32.mrb[2].mxu1 }
 0x2f6   : > { %v848_v28 = vadd.f32 %v846_v25, %v840_v24  ;;  %v830_v33 = vpop.f32.mrb[3].mxu1 }
 0x2f7   : > { %v849_v34 = vadd.f32 %v846_v25, %v841_v26 }
 0x2f8   : > { %v850_v37 = vadd.f32 %v848_v28, %v1057_v0 }
 0x2f9   : > { %v851_v31 = vadd.f32 %v849_v34, %v1063_v1 }
 0x2fa   : > { %v852_v39 = vmax.f32 %v850_v37, 0.0 }
 0x2fb   : > { %v853_v32 = vmax.f32 %v851_v31, 0.0 }
 0x2fc   : > { %854 = vst [vmem:[%s280_s18] sm:$0xff] %v852_v39 }
 0x2fd   : > { %855 = vst [vmem:[%s280_s18 + $0x8] sm:$0xff] %v853_v32 }
 0x2fe PF: > { %s17_s24 = sadd.s32 1, %s989_s24  }
 0x2ff   : > { %p14_p4 = scmp.ge.s32.totalorder %s17_s24, 4  }
 0x301   :  { %16 = sbr.rel (!%p14_p4) target bundleno = 1 (0x1), region = 82 }

// kernel: basic_block_forward.1
= control target key start
LH: loop header
LB: loop body
LE: loop exit
PB: predicated region body
PF: predicated region fallthrough
CT: control target
= control target key end

     0   :  { %s1041_s24 = smov 0   ;;  %s1347_s0 = inlined_call_operand.vmem [shape: f32[8,512], index: 0, kind: input, shape index: {}]   ;;  %s1348_s1 = inlined_call_operand.vmem [shape: bf16[3,8,24], index: 1, kind: input, shape index: {}]   ;;  %s1349_s2 = inlined_call_operand.vmem [shape: f32[8,1], index: 2, kind: input, shape index: {}]   ;;  %s1350_s3 = inlined_call_operand.vmem [shape: f32[8,1], index: 3, kind: input, shape index: {}]   ;;  %s1351_s4 = inlined_call_operand.vmem [shape: bf16[3,8,24], index: 4, kind: input, shape index: {}]   ;;  %s1352_s5 = inlined_call_operand.vmem [shape: f32[8,1], index: 5, kind: input, shape index: {}]   ;;  %s1353_s6 = inlined_call_operand.vmem [shape: f32[8,1], index: 6, kind: input, shape index: {}]   ;;  %s1354_s7 = inlined_call_operand.vmem [shape: f32[8,512], index: 7, kind: output, shape index: {}]  }
   0x1 LB: > { %s912_s25 = sadd.s32 4294967295, %s989_s24   ;;  %p916_p0 = scmp.ge.s32.totalorder %s989_s24, 1  ;;  %s989_s24 = sphi %s1041_s24, %s17_s24  }
   0x2   : > { %p238_p1 = scmp.lt.s32.totalorder %s989_s24, 3 }
   0x4   : > { %p239_p2 = pnand %p916_p0, %p238_p1 }
   0x5   : > { %s917_s26 = sshll.u32 (!%p239_p2), %s912_s25, 1  ;;  %s991_s8 = smov (!%p239_p2), 127   ;;  %v993_v2 = vmov (!%p239_p2), 0   ;;  %v583_v3 = vld [vmem:[%s1349_s2] sm:$0xff] (!%p239_p2)  ;;  %v285_v5 = vlaneseq (!%p239_p2)  ;;  %v1000_v28 = vmov (!%p239_p2), 0.0   ;;  %vm400_vm10 = vcmask (!%p239_p2), 1043456  }
   0x6   : > { %242 = sbr.rel (%p239_p2) target bundleno = 766 (0x2fe), region = 48  ;;  %p271_p3 = scmp.lt.s32.totalorder (!%p239_p2), %s917_s26, 3  ;;  %439 = vmatprep.mubr.bf16.mxu0 (!%p239_p2), %v993_v2  ;;  %981 = vset.pattern.permute.xlu0 (!%p239_p2), %v993_v2  ;;  %v591_v4 = vld [vmem:[%s1350_s3] sm:$0xff] (!%p239_p2)  ;;  %vm396_vm14 = vcmask (!%p239_p2), 195584  }
   0x7   : > { %s992_s9 = smov (!%p239_p2), 1   ;;  %982 = vset.pattern.permute.xlu1 (!%p239_p2), %v993_v2  ;;  %693 = vmatprep.mubr.bf16.mxu1 (!%p239_p2), %v993_v2  ;;  %s994_s10 = smov (!%p239_p2), 17   ;;  %v1103_v6 = vand.u32 (!%p239_p2), 127, %v285_v5  ;;  %v929_v5 = vld [vmem:[%s1348_s1 + $0x4] sm:$0xf] (!%p239_p2) }
   0x8   : > { %s995_s11 = smov (!%p239_p2), 16   ;;  %s996_s12 = smov (!%p239_p2), 15  }
   0x9   : > { %s997_s13 = smov (!%p239_p2), 113   ;;  %s998_s14 = smov (!%p239_p2), 112   ;;  %v287_v7 = vadd.s32 (!%p239_p2), 128, %v1103_v6  ;;  %v288_v8 = vcvt.s32.f32 (!%p239_p2), %v1103_v6  ;;  %vm385_vm6 = vcmp.lt.s32.totalorder (!%p239_p2), %v1103_v6, 127  ;;  %vm376_vm7 = vcmp.lt.s32.totalorder (!%p239_p2), %v1103_v6, 1 }
   0xa   : > { %s999_s15 = smov (!%p239_p2), 111   ;;  %vm344_vm8 = vcmp.lt.s32.totalorder (!%p239_p2), %v1103_v6, 17  ;;  %vm353_vm9 = vcmp.lt.s32.totalorder (!%p239_p2), %v1103_v6, 16  ;;  %vm362_vm11 = vcmp.lt.s32.totalorder (!%p239_p2), %v1103_v6, 15  ;;  %vm502_vm15 = vcmp.lt.s32.totalorder (!%p239_p2), %v1103_v6, 113 }
   0xb   : > { %v289_v9 = vcvt.s32.f32 (!%p239_p2), %v287_v7  ;;  %v291_v10 = vmul.f32 (!%p239_p2), 0.00390625, %v288_v8 }
   0xd   : > { %s1356_s26 = smov (!%p271_p3, %s917_s26), 3  ;;  %v292_v11 = vmul.f32 0.00390625, %v289_v9  ;;  %v293_v12 = vfloor.f32 %v291_v10 }
   0xe   : > { %s918_s27 = sshll.u32 %s1356_s26, 3 }
   0xf   : > { %s274_s30 = scalar_lea.vmem %s1347_s0, %s918_s27  ;;  %v294_v13 = vfloor.f32 %v292_v11  ;;  %v295_v14 = vmul.f32 256.0, %v293_v12  ;;  %s280_s18 = scalar_lea.vmem %s1354_s7, %s918_s27 }
  0x10   : > { %v1057_v0 = vld [vmem:[%s274_s30] sm:$0xff]  ;;  %v1063_v1 = vld [vmem:[%s274_s30 + $0x8] sm:$0xff] }
  0x11   : > { %381 = vrot.lane.b32.xlu1 %v1057_v0, %s991_s8  ;;  %372 = vrot.lane.b32.xlu0 %v1057_v0, %s992_s9  ;;  %v296_v15 = vmul.f32 256.0, %v294_v13  ;;  %v1107_v16 = vsub.f32 %v288_v8, %v295_v14 }
  0x13   : > { %v1109_v17 = vsub.f32 %v289_v9, %v296_v15  ;;  %v300_v18 = vmul.f32 0.0625, %v1107_v16  ;;  %vm320_vm4 = vcmp.ge.f32.partialorder %v1107_v16, 16.0  ;;  %vm326_vm12 = vcmp.lt.f32.partialorder %v1107_v16, 240.0 }
  0x14   : > { %v1127_v35 = vsel %vm320_vm4, 1.0, %v1000_v28  ;;  %v1189_v13 = vsel %vm326_vm12, 1.0, %v1000_v28 }
  0x15   : > { %383 = vrot.lane.b32.xlu1 %v1063_v1, %s991_s8  ;;  %374 = vrot.lane.b32.xlu0 %v1063_v1, %s992_s9  ;;  %v301_v19 = vmul.f32 0.0625, %v1109_v17  ;;  %v302_v20 = vfloor.f32 %v300_v18  ;;  %vm321_vm5 = vcmp.ge.f32.partialorder %v1109_v17, 16.0  ;;  %vm327_vm13 = vcmp.lt.f32.partialorder %v1109_v17, 240.0 }
  0x16   : > { %v1129_v36 = vsel %vm321_vm5, 1.0, %v1000_v28  ;;  %v1191_v14 = vsel %vm327_vm13, 1.0, %v1000_v28 }
  0x17   : > { %v303_v21 = vfloor.f32 %v301_v19  ;;  %v304_v22 = vmul.f32 16.0, %v302_v20 }
  0x19   : > { %342 = vrot.lane.b32.xlu1 %v1063_v1, %s994_s10  ;;  %340 = vrot.lane.b32.xlu0 %v1057_v0, %s994_s10  ;;  %v305_v23 = vmul.f32 16.0, %v303_v21  ;;  %v306_v24 = vsub.f32 %v1107_v16, %v304_v22 }
  0x1b   : > { %v307_v25 = vsub.f32 %v1109_v17, %v305_v23  ;;  %vm314_vm0 = vcmp.le.f32.partialorder %v306_v24, 14.0  ;;  %vm308_vm2 = vcmp.ge.f32.partialorder %v306_v24, 1.0 }
  0x1c   : > { %v1119_v29 = vsel %vm314_vm0, 1.0, %v1000_v28  ;;  %v1123_v31 = vsel %vm308_vm2, 1.0, %v1000_v28  ;;  %vm511_vm0 = vcmp.lt.s32.totalorder %v1103_v6, 112 }
  0x1d   : > { %351 = vrot.lane.b32.xlu1 %v1063_v1, %s995_s11  ;;  %349 = vrot.lane.b32.xlu0 %v1057_v0, %s995_s11  ;;  %vm315_vm1 = vcmp.le.f32.partialorder %v307_v25, 14.0  ;;  %vm309_vm3 = vcmp.ge.f32.partialorder %v307_v25, 1.0  ;;  %v1146_v46 = vmul.f32 %v1127_v35, %v1123_v31  ;;  %v1170_v61 = vmul.f32 %v1127_v35, %v1119_v29 }
  0x1e   : > { %v1121_v30 = vsel %vm315_vm1, 1.0, %v1000_v28  ;;  %v1125_v32 = vsel %vm309_vm3, 1.0, %v1000_v28  ;;  %v1200_v16 = vmul.f32 %v1189_v13, %v1123_v31  ;;  %vm520_vm1 = vcmp.lt.s32.totalorder %v1103_v6, 111 }
  0x1f   : > { %v1150_v47 = vmul.f32 %v1129_v36, %v1125_v32  ;;  %v1204_v21 = vmul.f32 %v1191_v14, %v1125_v32 }
  0x21   : > { %360 = vrot.lane.b32.xlu1 %v1063_v1, %s996_s12  ;;  %358 = vrot.lane.b32.xlu0 %v1057_v0, %s996_s12 }
  0x25   : > { %500 = vrot.lane.b32.xlu1 %v1063_v1, %s997_s13  ;;  %498 = vrot.lane.b32.xlu0 %v1057_v0, %s997_s13 }
  0x29   : > { %509 = vrot.lane.b32.xlu1 %v1063_v1, %s998_s14  ;;  %507 = vrot.lane.b32.xlu0 %v1057_v0, %s998_s14 }
  0x2d   : > { %518 = vrot.lane.b32.xlu1 %v1063_v1, %s999_s15  ;;  %516 = vrot.lane.b32.xlu0 %v1057_v0, %s999_s15 }
  0x31   : > { %586 = vperm.xlu0 %981, %v583_v3   ;;  %594 = vperm.xlu1 %982, %v591_v4   ;;  %v1178_v4 = vmul.f32 %v1129_v36, %v1121_v30 }
  0x83   : > { %v382_v26 = vpop.permute.xlu1 %381  ;;  %v373_v27 = vpop.permute.xlu0 %372 }
  0x87   : > { %v384_v33 = vpop.permute.xlu1 %383  ;;  %v375_v34 = vpop.permute.xlu0 %374 }
  0x88   : > { %v386_v37 = vsel %vm385_vm6, %v382_v26, %v384_v33  ;;  %v387_v38 = vsel %vm385_vm6, %v384_v33, %v382_v26  ;;  %v377_v39 = vsel %vm376_vm7, %v373_v27, %v375_v34  ;;  %v378_v40 = vsel %vm376_vm7, %v375_v34, %v373_v27 }
  0x89   : > { %v388_v41 = vmul.f32 %v1119_v29, %v386_v37  ;;  %v389_v42 = vmul.f32 %v1121_v30, %v387_v38  ;;  %v379_v43 = vmul.f32 %v1123_v31, %v378_v40  ;;  %v380_v44 = vmul.f32 %v1125_v32, %v377_v39 }
  0x8a   : > { %v1221_v38 = vmul.f32 %v1189_v13, %v1119_v29 }
  0x8b   : > { %v343_v45 = vpop.permute.xlu1 %342  ;;  %v341_v48 = vpop.permute.xlu0 %340  ;;  %v393_v49 = vpack.c.bf16 %v1063_v1, %v380_v44  ;;  %v392_v50 = vpack.c.bf16 %v1057_v0, %v379_v43  ;;  %v394_v53 = vpack.c.bf16 %v388_v41, %v388_v41  ;;  %v395_v54 = vpack.c.bf16 %v389_v42, %v389_v42  ;;  %v367_v42 = vld [vmem:[%s1348_s1] sm:$0xf] }
  0x8c   : > { %v345_v51 = vsel %vm344_vm8, %v341_v48, %v343_v45  ;;  %v346_v52 = vsel %vm344_vm8, %v343_v45, %v341_v48  ;;  %v1227_v41 = vmul.f32 %v1191_v14, %v1121_v30 }
  0x8d   : > { %407 = vmatprep.subr.bf16.mxu0 %v393_v49  ;;  %v347_v55 = vmul.f32 %v346_v52, %v1146_v46  ;;  %v348_v56 = vmul.f32 %v345_v51, %v1150_v47  ;;  %v402_v3 = vsel %vm400_vm10, %v394_v53, 0 }
  0x8e   : > { %408 = vmatpush1.bf16.msra.mxu0 %v392_v50 }
  0x8f   : > { %v352_v57 = vpop.permute.xlu1 %351  ;;  %930 = vmatprep.subr.msk.bf16.mxu0 %vm400_vm10, %v395_v54  ;;  %v350_v58 = vpop.permute.xlu0 %349 }
  0x90   : > { %v354_v59 = vsel %vm353_vm9, %v350_v58, %v352_v57  ;;  %v355_v60 = vsel %vm353_vm9, %v352_v57, %v350_v58 }
  0x91   : > { %v356_v62 = vmul.f32 %v1127_v35, %v355_v60  ;;  %v357_v63 = vmul.f32 %v1129_v36, %v354_v59 }
  0x92   : > { %410 = vmatpush1.bf16.msra.mxu0 %v402_v3 }
  0x93   : > { %v368_v7 = vpack.c.bf16 %v356_v62, %v347_v55  ;;  %v361_v8 = vpop.permute.xlu1 %360  ;;  %v359_v9 = vpop.permute.xlu0 %358  ;;  %v369_v10 = vpack.c.bf16 %v357_v63, %v348_v56  ;;  %v934_v56 = vld [vmem:[%s1348_s1 + $0x8] sm:$0xf] }
  0x94   : > { %v363_v11 = vsel %vm362_vm11, %v359_v9, %v361_v8  ;;  %v364_v12 = vsel %vm362_vm11, %v361_v8, %v359_v9 }
  0x95   : > { %v365_v15 = vmul.f32 %v364_v12, %v1170_v61  ;;  %v366_v17 = vmul.f32 %v363_v11, %v1178_v4  ;;  %931 = vmatmul.mubr.msk.bf16.vlgmr.msra.gmra.mrb[0].mxu0 %vm396_vm14, %v929_v5  ;;  %457 = vmatprep.subr.bf16.mxu0 %v369_v10  ;;  %v834_v11 = vld [vmem:[%s1352_s5] sm:$0xff] }
  0x96   : > { %458 = vmatpush1.bf16.msra.mxu0 %v368_v7  ;;  %489 = vmatprep.mubr.bf16.mxu0 %v993_v2  ;;  %v842_v12 = vld [vmem:[%s1353_s6] sm:$0xff] }
  0x97   : > { %v370_v18 = vpack.c.bf16 %v365_v15, %v365_v15  ;;  %v371_v19 = vpack.c.bf16 %v366_v17, %v366_v17  ;;  %v501_v20 = vpop.permute.xlu1 %500  ;;  %v499_v22 = vpop.permute.xlu0 %498 }
  0x98   : > { %v503_v23 = vsel %vm502_vm15, %v499_v22, %v501_v20  ;;  %v504_v24 = vsel %vm502_vm15, %v501_v20, %v499_v22 }
  0x99   : > { %932 = vmatprep.subr.msk.bf16.mxu0 %vm400_vm10, %v371_v19  ;;  %v452_v25 = vsel %vm400_vm10, %v370_v18, 0  ;;  %v505_v26 = vmul.f32 %v503_v23, %v1200_v16  ;;  %v506_v27 = vmul.f32 %v504_v24, %v1204_v21 }
  0x9a   : > { %460 = vmatpush1.bf16.msra.mxu0 %v452_v25 }
  0x9b   : > { %v510_v28 = vpop.permute.xlu1 %509  ;;  %v508_v33 = vpop.permute.xlu0 %507 }
  0x9c   : > { %v512_v34 = vsel %vm511_vm0, %v508_v33, %v510_v28  ;;  %v513_v37 = vsel %vm511_vm0, %v510_v28, %v508_v33 }
  0x9d   : > { %v514_v39 = vmul.f32 %v1189_v13, %v512_v34  ;;  %v515_v40 = vmul.f32 %v1191_v14, %v513_v37 }
  0x9f   : > { %v527_v43 = vpack.c.bf16 %v514_v39, %v505_v26  ;;  %v528_v44 = vpack.c.bf16 %v515_v40, %v506_v27  ;;  %v519_v45 = vpop.permute.xlu1 %518  ;;  %v517_v48 = vpop.permute.xlu0 %516 }
  0xa0   : > { %v521_v49 = vsel %vm520_vm1, %v517_v48, %v519_v45  ;;  %v522_v50 = vsel %vm520_vm1, %v519_v45, %v517_v48 }
  0xa1   : > { %933 = vmatmul.mubr.msk.bf16.vlgmr.msra.gmra.mrb[0].mxu0 %vm396_vm14, %v367_v42  ;;  %540 = vmatprep.subr.bf16.mxu0 %v528_v44  ;;  %v523_v51 = vmul.f32 %v521_v49, %v1221_v38  ;;  %v524_v52 = vmul.f32 %v522_v50, %v1227_v41 }
  0xa2   : > { %541 = vmatpush1.bf16.msra.mxu0 %v527_v43  ;;  %572 = vmatprep.mubr.bf16.mxu0 %v993_v2 }
  0xa3   : > { %v529_v53 = vpack.c.bf16 %v523_v51, %v523_v51  ;;  %v530_v54 = vpack.c.bf16 %v524_v52, %v524_v52 }
  0xa5   : > { %935 = vmatprep.subr.msk.bf16.mxu0 %vm400_vm10, %v530_v54  ;;  %v535_v55 = vsel %vm400_vm10, %v529_v53, 0 }
  0xa6   : > { %543 = vmatpush1.bf16.msra.mxu0 %v535_v55 }
  0xad   : > { %936 = vmatmul.mubr.msk.bf16.vlgmr.msra.gmra.mrb[0].mxu0 %vm396_vm14, %v934_v56 }
  0xb0   : > { %v587_v57 = vpop.permute.xlu0 %586  ;;  %v595_v59 = vpop.permute.xlu1 %594 }
 0x180   : > { %v574_v58 = vpop.f32.mrb[0].mxu0 }
 0x181   : > { %v589_v60 = vmul.f32 %v587_v57, %v574_v58  ;;  %v576_v62 = vpop.f32.mrb[1].mxu0 }
 0x182   : > { %v590_v63 = vmul.f32 %v587_v57, %v576_v62  ;;  %v578_v3 = vpop.f32.mrb[2].mxu0 }
 0x183   : > { %v597_v5 = vadd.f32 %v595_v59, %v589_v60  ;;  %v579_v7 = vpop.f32.mrb[3].mxu0 }
 0x184   : > { %v598_v8 = vadd.f32 %v595_v59, %v590_v63 }
 0x185   : > { %v599_v9 = vmax.f32 %v597_v5, 0.0 }
 0x186   : > { %v600_v10 = vmax.f32 %v598_v8, 0.0 }
 0x187   : > { %630 = vrot.lane.b32.xlu1 %v599_v9, %s992_s9 }
 0x188   : > { %632 = vrot.lane.b32.xlu0 %v600_v10, %s992_s9 }
 0x18b   : > { %638 = vrot.lane.b32.xlu1 %v599_v9, %s991_s8 }
 0x18c   : > { %640 = vrot.lane.b32.xlu0 %v600_v10, %s991_s8 }
 0x18f   : > { %601 = vrot.lane.b32.xlu1 %v599_v9, %s994_s10 }
 0x190   : > { %603 = vrot.lane.b32.xlu0 %v600_v10, %s994_s10 }
 0x193   : > { %609 = vrot.lane.b32.xlu1 %v599_v9, %s995_s11 }
 0x194   : > { %611 = vrot.lane.b32.xlu0 %v600_v10, %s995_s11 }
 0x197   : > { %617 = vrot.lane.b32.xlu1 %v599_v9, %s996_s12 }
 0x198   : > { %619 = vrot.lane.b32.xlu0 %v600_v10, %s996_s12 }
 0x19b   : > { %752 = vrot.lane.b32.xlu1 %v599_v9, %s997_s13 }
 0x19c   : > { %754 = vrot.lane.b32.xlu0 %v600_v10, %s997_s13 }
 0x19f   : > { %760 = vrot.lane.b32.xlu1 %v599_v9, %s998_s14 }
 0x1a0   : > { %762 = vrot.lane.b32.xlu0 %v600_v10, %s998_s14 }
 0x1a3   : > { %768 = vrot.lane.b32.xlu1 %v599_v9, %s999_s15 }
 0x1a4   : > { %770 = vrot.lane.b32.xlu0 %v600_v10, %s999_s15 }
 0x1a7   : > { %837 = vperm.xlu1 %982, %v834_v11  }
 0x1a8   : > { %845 = vperm.xlu0 %981, %v842_v12  }
 0x1f9   : > { %v631_v15 = vpop.permute.xlu1 %630 }
 0x1fa   : > { %v633_v17 = vpop.permute.xlu0 %632 }
 0x1fb   : > { %v634_v18 = vsel %vm376_vm7, %v631_v15, %v633_v17  ;;  %v635_v19 = vsel %vm376_vm7, %v633_v17, %v631_v15 }
 0x1fc   : > { %v636_v20 = vmul.f32 %v1123_v31, %v635_v19  ;;  %v637_v22 = vmul.f32 %v1125_v32, %v634_v18 }
 0x1fd   : > { %v639_v23 = vpop.permute.xlu1 %638 }
 0x1fe   : > { %v641_v24 = vpop.permute.xlu0 %640  ;;  %v649_v25 = vpack.c.bf16 %v600_v10, %v637_v22  ;;  %v648_v26 = vpack.c.bf16 %v599_v9, %v636_v20 }
 0x1ff   : > { %v642_v27 = vsel %vm385_vm6, %v639_v23, %v641_v24  ;;  %v643_v28 = vsel %vm385_vm6, %v641_v24, %v639_v23  ;;  %v942_v23 = vld [vmem:[%s1351_s4 + $0x8] sm:$0xf] }
 0x200   : > { %v644_v33 = vmul.f32 %v1119_v29, %v642_v27  ;;  %v645_v34 = vmul.f32 %v1121_v30, %v643_v28  ;;  %661 = vmatprep.subr.bf16.mxu1 %v649_v25  ;;  %v937_v30 = vld [vmem:[%s1351_s4 + $0x4] sm:$0xf] }
 0x201   : > { %662 = vmatpush1.bf16.msra.mxu1 %v648_v26  ;;  %v602_v37 = vpop.permute.xlu1 %601 }
 0x202   : > { %v650_v31 = vpack.c.bf16 %v644_v33, %v644_v33  ;;  %v651_v39 = vpack.c.bf16 %v645_v34, %v645_v34  ;;  %v604_v32 = vpop.permute.xlu0 %603 }
 0x203   : > { %v605_v42 = vsel %vm344_vm8, %v602_v37, %v604_v32  ;;  %v606_v43 = vsel %vm344_vm8, %v604_v32, %v602_v37 }
 0x204   : > { %938 = vmatprep.subr.msk.bf16.mxu1 %vm400_vm10, %v651_v39  ;;  %v656_v40 = vsel %vm400_vm10, %v650_v31, 0  ;;  %v607_v49 = vmul.f32 %v606_v43, %v1146_v46  ;;  %v608_v50 = vmul.f32 %v605_v42, %v1150_v47 }
 0x205   : > { %664 = vmatpush1.bf16.msra.mxu1 %v656_v40  ;;  %v610_v29 = vpop.permute.xlu1 %609 }
 0x206   : > { %v612_v44 = vpop.permute.xlu0 %611 }
 0x207   : > { %v613_v45 = vsel %vm353_vm9, %v610_v29, %v612_v44  ;;  %v614_v48 = vsel %vm353_vm9, %v612_v44, %v610_v29 }
 0x208   : > { %v615_v51 = vmul.f32 %v1127_v35, %v614_v48  ;;  %v616_v52 = vmul.f32 %v1129_v36, %v613_v45  ;;  %939 = vmatmul.mubr.msk.bf16.vlgmr.msra.gmra.mrb[0].mxu1 %vm396_vm14, %v937_v30 }
 0x209   : > { %v618_v53 = vpop.permute.xlu1 %617  ;;  %743 = vmatprep.mubr.bf16.mxu1 %v993_v2 }
 0x20a   : > { %v626_v54 = vpack.c.bf16 %v615_v51, %v607_v49  ;;  %v620_v55 = vpop.permute.xlu0 %619  ;;  %v627_v56 = vpack.c.bf16 %v616_v52, %v608_v50 }
 0x20b   : > { %v621_v57 = vsel %vm362_vm11, %v618_v53, %v620_v55  ;;  %v622_v46 = vsel %vm362_vm11, %v620_v55, %v618_v53 }
 0x20c   : > { %v623_v47 = vmul.f32 %v622_v46, %v1170_v61  ;;  %v624_v35 = vmul.f32 %v621_v57, %v1178_v4  ;;  %711 = vmatprep.subr.bf16.mxu1 %v627_v56  ;;  %v625_v4 = vld [vmem:[%s1351_s4] sm:$0xf] }
 0x20d   : > { %712 = vmatpush1.bf16.msra.mxu1 %v626_v54  ;;  %v753_v36 = vpop.permute.xlu1 %752 }
 0x20e   : > { %v628_v58 = vpack.c.bf16 %v623_v47, %v623_v47  ;;  %v629_v59 = vpack.c.bf16 %v624_v35, %v624_v35  ;;  %v755_v60 = vpop.permute.xlu0 %754 }
 0x20f   : > { %v756_v63 = vsel %vm502_vm15, %v753_v36, %v755_v60  ;;  %v757_v3 = vsel %vm502_vm15, %v755_v60, %v753_v36 }
 0x210   : > { %940 = vmatprep.subr.msk.bf16.mxu1 %vm400_vm10, %v629_v59  ;;  %v706_v62 = vsel %vm400_vm10, %v628_v58, 0  ;;  %v758_v9 = vmul.f32 %v756_v63, %v1200_v16  ;;  %v759_v10 = vmul.f32 %v757_v3, %v1204_v21 }
 0x211   : > { %714 = vmatpush1.bf16.msra.mxu1 %v706_v62  ;;  %v761_v61 = vpop.permute.xlu1 %760 }
 0x212   : > { %v763_v5 = vpop.permute.xlu0 %762 }
 0x213   : > { %v764_v7 = vsel %vm511_vm0, %v761_v61, %v763_v5  ;;  %v765_v8 = vsel %vm511_vm0, %v763_v5, %v761_v61 }
 0x214   : > { %v766_v11 = vmul.f32 %v1189_v13, %v764_v7  ;;  %v767_v12 = vmul.f32 %v1191_v14, %v765_v8  ;;  %941 = vmatmul.mubr.msk.bf16.vlgmr.msra.gmra.mrb[0].mxu1 %vm396_vm14, %v625_v4 }
 0x215   : > { %v769_v15 = vpop.permute.xlu1 %768  ;;  %823 = vmatprep.mubr.bf16.mxu1 %v993_v2 }
 0x216   : > { %v778_v17 = vpack.c.bf16 %v766_v11, %v758_v9  ;;  %v771_v18 = vpop.permute.xlu0 %770  ;;  %v779_v19 = vpack.c.bf16 %v767_v12, %v759_v10 }
 0x217   : > { %v772_v20 = vsel %vm520_vm1, %v769_v15, %v771_v18  ;;  %v773_v16 = vsel %vm520_vm1, %v771_v18, %v769_v15 }
 0x218   : > { %v774_v21 = vmul.f32 %v772_v20, %v1221_v38  ;;  %v775_v13 = vmul.f32 %v773_v16, %v1227_v41  ;;  %791 = vmatprep.subr.bf16.mxu1 %v779_v19 }
 0x219   : > { %792 = vmatpush1.bf16.msra.mxu1 %v778_v17 }
 0x21a   : > { %v780_v14 = vpack.c.bf16 %v774_v21, %v774_v21  ;;  %v781_v22 = vpack.c.bf16 %v775_v13, %v775_v13 }
 0x21c   : > { %943 = vmatprep.subr.msk.bf16.mxu1 %vm400_vm10, %v781_v22  ;;  %v786_v2 = vsel %vm400_vm10, %v780_v14, 0 }
 0x21d   : > { %794 = vmatpush1.bf16.msra.mxu1 %v786_v2 }
 0x220   : > { %944 = vmatmul.mubr.msk.bf16.vlgmr.msra.gmra.mrb[0].mxu1 %vm396_vm14, %v942_v23 }
 0x226   : > { %v838_v6 = vpop.permute.xlu1 %837 }
 0x227   : > { %v846_v25 = vpop.permute.xlu0 %845 }
 0x2f3   : > { %v825_v38 = vpop.f32.mrb[0].mxu1 }
 0x2f4   : > { %v840_v24 = vmul.f32 %v838_v6, %v825_v38  ;;  %v827_v41 = vpop.f32.mrb[1].mxu1 }
 0x2f5   : > { %v841_v26 = vmul.f32 %v838_v6, %v827_v41  ;;  %v829_v27 = vpop.f32.mrb[2].mxu1 }
 0x2f6   : > { %v848_v28 = vadd.f32 %v846_v25, %v840_v24  ;;  %v830_v33 = vpop.f32.mrb[3].mxu1 }
 0x2f7   : > { %v849_v34 = vadd.f32 %v846_v25, %v841_v26 }
 0x2f8   : > { %v850_v37 = vadd.f32 %v848_v28, %v1057_v0 }
 0x2f9   : > { %v851_v31 = vadd.f32 %v849_v34, %v1063_v1 }
 0x2fa   : > { %v852_v39 = vmax.f32 %v850_v37, 0.0 }
 0x2fb   : > { %v853_v32 = vmax.f32 %v851_v31, 0.0 }
 0x2fc   : > { %854 = vst [vmem:[%s280_s18] sm:$0xff] %v852_v39 }
 0x2fd   : > { %855 = vst [vmem:[%s280_s18 + $0x8] sm:$0xff] %v853_v32 }
 0x2fe PF: > { %s17_s24 = sadd.s32 1, %s989_s24  }
 0x2ff   : > { %p14_p4 = scmp.ge.s32.totalorder %s17_s24, 4  }
 0x301   :  { %16 = sbr.rel (!%p14_p4) target bundleno = 1 (0x1), region = 82 }

</bundles_post_ra>
